<compile_context>
chip_gen: v5e
topology: v5e:2x2
jax: 0.10.0
libtpu: 0.0.40
codegen_flags: <defaults>
</compile_context>

<pallas_src>
import functools
import numpy as np
import jax
import jax.numpy as jnp
from jax.experimental import pallas as pl
from jax.experimental.pallas import tpu as pltpu


def _round_up(x, m):
    return (x + m - 1) // m * m


# ---------------------------------------------------------------------------
# Fused matmul kernel:  out = post_act( pre_act(A) @ W + b )
# ---------------------------------------------------------------------------
def _matmul_kernel(a_ref, w_ref, b_ref, o_ref, acc_ref, *, pre_act, post_act):
    k = pl.program_id(2)

    @pl.when(k == 0)
    def _():
        acc_ref[...] = jnp.zeros_like(acc_ref)

    a = a_ref[...]
    if pre_act == "lrelu":          # LeakyReLU(0.2) fused onto the A tile (VPU)
        a = jnp.where(a > 0, a, a * 0.2)
    elif pre_act == "relu":
        a = jnp.maximum(a, 0)

    acc_ref[...] += jnp.dot(a, w_ref[...], preferred_element_type=jnp.float32)

    @pl.when(k == pl.num_programs(2) - 1)
    def _():
        y = acc_ref[...] + b_ref[...]
        if post_act == "tanh":
            y = jnp.tanh(y)
        o_ref[...] = y.astype(o_ref.dtype)


def matmul_fused(a, wmat, bvec, n_valid, *, pre_act="none", post_act="none",
                 out_dtype=jnp.bfloat16):
    """a:(M,K) bf16  @  wmat:(Kp,Np) bf16 (pre-padded)  + bvec:(1,Np) f32."""
    M, K = a.shape
    Kp, Np = wmat.shape

    tm = min(256, _round_up(M, 8))
    Mp = _round_up(M, tm)
    tn = 256 if Np % 256 == 0 else 128
    if Kp % 512 == 0:
        tk = 512
    elif Kp % 256 == 0:
        tk = 256
    else:
        tk = 128

    a_p = jnp.pad(a.astype(jnp.bfloat16), ((0, Mp - M), (0, Kp - K)))

    out = pl.pallas_call(
        functools.partial(_matmul_kernel, pre_act=pre_act, post_act=post_act),
        out_shape=jax.ShapeDtypeStruct((Mp, Np), out_dtype),
        grid_spec=pltpu.PrefetchScalarGridSpec(
            num_scalar_prefetch=0,
            grid=(Mp // tm, Np // tn, Kp // tk),
            in_specs=[
                pl.BlockSpec((tm, tk), lambda i, j, k: (i, k)),
                pl.BlockSpec((tk, tn), lambda i, j, k: (k, j)),
                pl.BlockSpec((1, tn), lambda i, j, k: (0, j)),
            ],
            out_specs=pl.BlockSpec((tm, tn), lambda i, j, k: (i, j)),
            scratch_shapes=[pltpu.VMEM((tm, tn), jnp.float32)],
        ),
        compiler_params=pltpu.CompilerParams(
            dimension_semantics=("parallel", "parallel", "arbitrary")),
    )(a_p, wmat, bvec)
    return out[:M, :n_valid]


# ---------------------------------------------------------------------------
# BatchNorm2d (training-mode batch stats, biased variance) — two tiled kernels
# ---------------------------------------------------------------------------
def _bn_stats_kernel(x_ref, s_ref, ss_ref):
    @pl.when(pl.program_id(0) == 0)
    def _():
        s_ref[...] = jnp.zeros_like(s_ref)
        ss_ref[...] = jnp.zeros_like(ss_ref)

    x = x_ref[...].astype(jnp.float32)
    s_ref[...] += jnp.sum(x, axis=0, keepdims=True)
    ss_ref[...] += jnp.sum(x * x, axis=0, keepdims=True)


def _bn_apply_kernel(x_ref, sc_ref, sh_ref, o_ref):
    x = x_ref[...].astype(jnp.float32)
    o_ref[...] = (x * sc_ref[...] + sh_ref[...]).astype(o_ref.dtype)


def batchnorm2d(x, gamma, beta, *, eps=1e-5):
    """x: NHWC. Per-channel batch statistics over (N, H, W)."""
    N, H, W, C = x.shape
    M = N * H * W
    Cp = _round_up(C, 128)
    tr = min(256, _round_up(M, 8))
    Mp = _round_up(M, tr)
    x_p = jnp.pad(x.reshape(M, C), ((0, Mp - M), (0, Cp - C)))

    s, ss = pl.pallas_call(
        _bn_stats_kernel,
        out_shape=(jax.ShapeDtypeStruct((1, Cp), jnp.float32),
                   jax.ShapeDtypeStruct((1, Cp), jnp.float32)),
        grid=(Mp // tr,),
        in_specs=[pl.BlockSpec((tr, Cp), lambda i: (i, 0))],
        out_specs=(pl.BlockSpec((1, Cp), lambda i: (0, 0)),
                   pl.BlockSpec((1, Cp), lambda i: (0, 0))),
        compiler_params=pltpu.CompilerParams(dimension_semantics=("arbitrary",)),
    )(x_p)

    mean = s[0, :C] / M
    var = jnp.maximum(ss[0, :C] / M - mean * mean, 0.0)
    scale = gamma * jax.lax.rsqrt(var + eps)
    shift = beta - mean * scale
    scale_p = jnp.pad(scale, (0, Cp - C)).reshape(1, Cp)
    shift_p = jnp.pad(shift, (0, Cp - C)).reshape(1, Cp)

    y = pl.pallas_call(
        _bn_apply_kernel,
        out_shape=jax.ShapeDtypeStruct((Mp, Cp), jnp.bfloat16),
        grid=(Mp // tr,),
        in_specs=[pl.BlockSpec((tr, Cp), lambda i: (i, 0)),
                  pl.BlockSpec((1, Cp), lambda i: (0, 0)),
                  pl.BlockSpec((1, Cp), lambda i: (0, 0))],
        out_specs=pl.BlockSpec((tr, Cp), lambda i: (i, 0)),
        compiler_params=pltpu.CompilerParams(dimension_semantics=("parallel",)),
    )(x_p, scale_p, shift_p)
    return y[:M, :C].reshape(N, H, W, C)


# ---------------------------------------------------------------------------
# im2col (NHWC, channels-last columns) + conv wrappers
# ---------------------------------------------------------------------------
def _im2col_nhwc(x, kh, kw, *, stride, pad):
    N, H, W, C = x.shape
    Ho = (H + 2 * pad - kh) // stride + 1
    Wo = (W + 2 * pad - kw) // stride + 1
    xp = jnp.pad(x, ((0, 0), (pad, pad), (pad, pad), (0, 0)))
    cols = []
    for ky in range(kh):
        for kx in range(kw):
            cols.append(xp[:, ky:ky + stride * Ho:stride,
                           kx:kx + stride * Wo:stride, :])
    patches = jnp.stack(cols, axis=3)                    # (N,Ho,Wo,kh*kw,C)
    return patches.reshape(N * Ho * Wo, kh * kw * C), (N, Ho, Wo)


def conv_down(x, p, *, pre_act):
    """Conv2d(k=4, s=2, p=1), optional fused pre-activation."""
    a, (N, Ho, Wo) = _im2col_nhwc(x, 4, 4, stride=2, pad=1)
    out = matmul_fused(a, p["wmat"], p["bvec"], p["n_valid"], pre_act=pre_act)
    return out.reshape(N, Ho, Wo, p["cout"])


def conv_transpose_up(x, p, *, pre_act, post_act):
    """ConvTranspose2d(k=4, s=2, p=1) via output-phase (sub-pixel) decomposition.

    One shared 3x3/stride-1 im2col; the packed weight (9*Cin, 4*Cout) holds the
    four output phases; results are pixel-shuffled into the 2x upsampled map.
    """
    a, (N, H, W) = _im2col_nhwc(x, 3, 3, stride=1, pad=1)
    out = matmul_fused(a, p["wmat"], p["bvec"], p["n_valid"],
                       pre_act=pre_act, post_act=post_act)
    cout = p["cout"]
    out = out.reshape(N, H, W, 2, 2, cout)               # (n,m,l,py,px,co)
    out = out.transpose(0, 1, 3, 2, 4, 5).reshape(N, 2 * H, 2 * W, cout)
    return out


# ---------------------------------------------------------------------------
# Parameter packing (weights padded / bf16-cast once at build time)
# ---------------------------------------------------------------------------
def _pack_down_conv(key, cin, cout, use_bias):
    kw_, kb_ = jax.random.split(key)
    w = np.asarray(jax.random.normal(kw_, (cout, cin, 4, 4), jnp.float32)) * 0.05
    b = (np.asarray(jax.random.normal(kb_, (cout,), jnp.float32)) * 0.05
         if use_bias else np.zeros((cout,), np.float32))
    K = 16 * cin
    Kp, Np = _round_up(K, 128), _round_up(cout, 128)
    wmat = np.zeros((Kp, Np), np.float32)
    wmat[:K, :cout] = w.transpose(2, 3, 1, 0).reshape(K, cout)   # (ky,kx,ci) x co
    bvec = np.zeros((1, Np), np.float32)
    bvec[0, :cout] = b
    return {"wmat": jnp.asarray(wmat, jnp.bfloat16),
            "bvec": jnp.asarray(bvec, jnp.float32),
            "n_valid": cout, "cout": cout}


def _pack_up_convT(key, cin, cout, use_bias):
    kw_, kb_ = jax.random.split(key)
    w = np.asarray(jax.random.normal(kw_, (cin, cout, 4, 4), jnp.float32)) * 0.05
    b = (np.asarray(jax.random.normal(kb_, (cout,), jnp.float32)) * 0.05
         if use_bias else np.zeros((cout,), np.float32))
    # phase -> (window offset -> kernel tap) for k=4, s=2, p=1:
    #   even output rows use input rows (m-1, m) with kernel rows (3, 1)
    #   odd  output rows use input rows (m, m+1) with kernel rows (2, 0)
    taps = {0: {0: 3, 1: 1}, 1: {1: 2, 2: 0}}
    E = np.zeros((3, 3, cin, 2, 2, cout), np.float32)     # (wy,wx,ci,py,px,co)
    for py in (0, 1):
        for wy in (0, 1, 2):
            ky = taps[py].get(wy)
            if ky is None:
                continue
            for px in (0, 1):
                for wx in (0, 1, 2):
                    kx = taps[px].get(wx)
                    if kx is None:
                        continue
                    E[wy, wx, :, py, px, :] = w[:, :, ky, kx]
    K, Ncols = 9 * cin, 4 * cout
    Kp, Np = _round_up(K, 128), _round_up(Ncols, 128)
    wmat = np.zeros((Kp, Np), np.float32)
    wmat[:K, :Ncols] = E.reshape(K, Ncols)
    bvec = np.zeros((1, Np), np.float32)
    bvec[0, :Ncols] = np.tile(b, 4)
    return {"wmat": jnp.asarray(wmat, jnp.bfloat16),
            "bvec": jnp.asarray(bvec, jnp.float32),
            "n_valid": Ncols, "cout": cout}


def build_unet_block(key, outer_nc, inner_nc, input_nc=None, submodule=None,
                     outermost=False, innermost=False):
    """Mirrors UnetSkipConnectionBlock.__init__ with norm_layer=nn.BatchNorm2d."""
    if input_nc is None:
        input_nc = outer_nc
    use_bias = False            # norm_layer == BatchNorm2d  =>  conv bias off
    kd, ku = jax.random.split(key)
    blk = {"outermost": outermost, "innermost": innermost, "submodule": submodule}
    blk["down"] = _pack_down_conv(kd, input_nc, inner_nc, use_bias)
    if (not outermost) and (not innermost):
        blk["downnorm"] = {"gamma": jnp.ones((inner_nc,), jnp.float32),
                           "beta": jnp.zeros((inner_nc,), jnp.float32)}
    up_in = inner_nc if innermost else inner_nc * 2
    blk["up"] = _pack_up_convT(ku, up_in, outer_nc,
                               True if outermost else use_bias)
    if not outermost:
        blk["upnorm"] = {"gamma": jnp.ones((outer_nc,), jnp.float32),
                         "beta": jnp.zeros((outer_nc,), jnp.float32)}
    return blk


# ---------------------------------------------------------------------------
# Forward pass (NHWC internally; NCHW at the boundary, like PyTorch)
# ---------------------------------------------------------------------------
def _unet_block_forward(blk, x):
    # down: [LeakyReLU(0.2)] -> Conv(k4,s2,p1) -> [BatchNorm]
    pre = "none" if blk["outermost"] else "lrelu"
    h = conv_down(x, blk["down"], pre_act=pre)
    if "downnorm" in blk:
        h = batchnorm2d(h, blk["downnorm"]["gamma"], blk["downnorm"]["beta"])
    if blk["submodule"] is not None:
        h = _unet_block_forward(blk["submodule"], h)
    # up: ReLU -> ConvTranspose(k4,s2,p1) -> [Tanh | BatchNorm]
    post = "tanh" if blk["outermost"] else "none"
    u = conv_transpose_up(h, blk["up"], pre_act="relu", post_act=post)
    if blk["outermost"]:
        return u
    u = batchnorm2d(u, blk["upnorm"]["gamma"], blk["upnorm"]["beta"])
    return jnp.concatenate([x, u], axis=-1)          # skip connection (lane dim)


def unet_forward_nchw(params, x_nchw):
    x = jnp.transpose(x_nchw, (0, 2, 3, 1)).astype(jnp.bfloat16)
    y = _unet_block_forward(params, x)
    return jnp.transpose(y, (0, 3, 1, 2)).astype(jnp.float32)


# TODO(synk): BatchNorm running-stats update (training side effect) and Dropout
# (use_dropout defaults to False) are not materialized; they do not affect the
# forward output computed here.

if __name__ == "__main__":
    key = jax.random.PRNGKey(0)
    k_in, k_mid, k_out, kx = jax.random.split(key, 4)

    # 3-level nested U-Net block (innermost <- middle <- outermost), exercising
    # all three variants of UnetSkipConnectionBlock.
    inner = build_unet_block(k_in, outer_nc=16, inner_nc=32, innermost=True)
    mid = build_unet_block(k_mid, outer_nc=8, inner_nc=16, submodule=inner)
    outer = build_unet_block(k_out, outer_nc=3, inner_nc=8, input_nc=3,
                             submodule=mid, outermost=True)

    x = jax.random.normal(kx, (2, 3, 16, 16), jnp.float32)

    fwd = jax.jit(lambda inp: unet_forward_nchw(outer, inp))
    out = jax.block_until_ready(fwd(x))

    assert out.shape == (2, 3, 16, 16), out.shape
    assert bool(jnp.all(jnp.isfinite(out)))
    print("KERNEL_OK")
</pallas_src>

<mosaic_0001>
module attributes {stable_mosaic.version = 11 : i64} {
  func.func @_matmul_kernel(%arg0: i32, %arg1: i32, %arg2: i32, %arg3: memref<128x128xbf16, #tpu.memory_space<vmem>>, %arg4: memref<128x128xbf16, #tpu.memory_space<vmem>>, %arg5: memref<1x128xf32, #tpu.memory_space<vmem>>, %arg6: memref<128x128xbf16, #tpu.memory_space<vmem>>, %arg7: memref<128x128xf32, #tpu.memory_space<vmem>>) attributes {dimension_semantics = [#tpu.dimension_semantics<parallel>, #tpu.dimension_semantics<parallel>, #tpu.dimension_semantics<arbitrary>], iteration_bounds = array<i64: 1, 1, 1>, scalar_prefetch = 0 : i64, scratch_operands = 1 : i64, tpu.core_type = #tpu.core_type<tc>, window_params = [{transform_indices = @transform_0, window_bounds = array<i64: 128, 128>}, {transform_indices = @transform_1, window_bounds = array<i64: 128, 128>}, {transform_indices = @transform_2, window_bounds = array<i64: 1, 128>}, {transform_indices = @transform_3, window_bounds = array<i64: 128, 128>}]} {
    %c0_i32 = arith.constant 0 : i32
    %0 = arith.cmpi eq, %arg2, %c0_i32 : i32
    %1 = arith.extui %0 : i1 to i32
    %c0_i32_0 = arith.constant 0 : i32
    %2 = arith.cmpi ne, %1, %c0_i32_0 : i32
    scf.if %2 {
      %cst_10 = arith.constant 0.000000e+00 : f32
      %12 = vector.broadcast %cst_10 : f32 to vector<128x128xf32>
      %c0_11 = arith.constant 0 : index
      %c0_12 = arith.constant 0 : index
      %13 = vector.load %arg7[%c0_11, %c0_12] : memref<128x128xf32, #tpu.memory_space<vmem>>, vector<128x128xf32>
      tpu.vector_store %arg7[%c0_11, %c0_12], %12 {strides = array<i32>} : memref<128x128xf32, #tpu.memory_space<vmem>>, vector<128x128xf32>,
    } else {
    }
    %c0 = arith.constant 0 : index
    %c0_1 = arith.constant 0 : index
    %3 = vector.load %arg3[%c0, %c0_1] : memref<128x128xbf16, #tpu.memory_space<vmem>>, vector<128x128xbf16>
    %c0_2 = arith.constant 0 : index
    %c0_3 = arith.constant 0 : index
    %4 = vector.load %arg7[%c0_2, %c0_3] : memref<128x128xf32, #tpu.memory_space<vmem>>, vector<128x128xf32>
    %c0_4 = arith.constant 0 : index
    %c0_5 = arith.constant 0 : index
    %5 = vector.load %arg4[%c0_4, %c0_5] : memref<128x128xbf16, #tpu.memory_space<vmem>>, vector<128x128xbf16>
    %cst = arith.constant dense<0.000000e+00> : vector<128x128xf32>
    %6 = tpu.matmul %3, %5, %cst {dimension_numbers = #tpu.dot_dimension_numbers<[1], [0], [0], [1], [0, 0, 1, 1], [], []>} : vector<128x128xbf16>, vector<128x128xbf16>, vector<128x128xf32> -> vector<128x128xf32>
    %7 = arith.addf %4, %6 : vector<128x128xf32>
    %c0_6 = arith.constant 0 : index
    %c0_7 = arith.constant 0 : index
    %8 = vector.load %arg7[%c0_6, %c0_7] : memref<128x128xf32, #tpu.memory_space<vmem>>, vector<128x128xf32>
    tpu.vector_store %arg7[%c0_6, %c0_7], %7 {strides = array<i32>} : memref<128x128xf32, #tpu.memory_space<vmem>>, vector<128x128xf32>,
    %c0_i32_8 = arith.constant 0 : i32
    %9 = arith.cmpi eq, %arg2, %c0_i32_8 : i32
    %10 = arith.extui %9 : i1 to i32
    %c0_i32_9 = arith.constant 0 : i32
    %11 = arith.cmpi ne, %10, %c0_i32_9 : i32
    scf.if %11 {
      %c0_10 = arith.constant 0 : index
      %c0_11 = arith.constant 0 : index
      %12 = vector.load %arg7[%c0_10, %c0_11] : memref<128x128xf32, #tpu.memory_space<vmem>>, vector<128x128xf32>
      %c0_12 = arith.constant 0 : index
      %c0_13 = arith.constant 0 : index
      %13 = vector.load %arg5[%c0_12, %c0_13] : memref<1x128xf32, #tpu.memory_space<vmem>>, vector<1x128xf32>
      %14 = vector.broadcast %13 : vector<1x128xf32> to vector<128x128xf32>
      %15 = arith.addf %12, %14 : vector<128x128xf32>
      %16 = arith.truncf %15 : vector<128x128xf32> to vector<128x128xbf16>
      %c0_14 = arith.constant 0 : index
      %c0_15 = arith.constant 0 : index
      %17 = vector.load %arg6[%c0_14, %c0_15] : memref<128x128xbf16, #tpu.memory_space<vmem>>, vector<128x128xbf16>
      tpu.vector_store %arg6[%c0_14, %c0_15], %16 {strides = array<i32>} : memref<128x128xbf16, #tpu.memory_space<vmem>>, vector<128x128xbf16>,
    } else {
    }
    return
  }
  func.func @transform_0(%arg0: i32, %arg1: i32, %arg2: i32) -> (i32, i32) {
    %c0_i32 = arith.constant 0 : i32
    return %arg0, %arg2 : i32, i32
  }
  func.func @transform_1(%arg0: i32, %arg1: i32, %arg2: i32) -> (i32, i32) {
    %c0_i32 = arith.constant 0 : i32
    return %arg2, %arg1 : i32, i32
  }
  func.func @transform_2(%arg0: i32, %arg1: i32, %arg2: i32) -> (i32, i32) {
    %c0_i32 = arith.constant 0 : i32
    %c0_i32_0 = arith.constant 0 : i32
    return %c0_i32, %arg1 : i32, i32
  }
  func.func @transform_3(%arg0: i32, %arg1: i32, %arg2: i32) -> (i32, i32) {
    %c0_i32 = arith.constant 0 : i32
    return %arg0, %arg1 : i32, i32
  }
}

module attributes {stable_mosaic.version = 11 : i64} {
  func.func @_bn_stats_kernel(%arg0: i32, %arg1: memref<32x128xbf16, #tpu.memory_space<vmem>>, %arg2: memref<1x128xf32, #tpu.memory_space<vmem>>, %arg3: memref<1x128xf32, #tpu.memory_space<vmem>>) attributes {dimension_semantics = [#tpu.dimension_semantics<arbitrary>], iteration_bounds = array<i64: 1>, scalar_prefetch = 0 : i64, scratch_operands = 0 : i64, tpu.core_type = #tpu.core_type<tc>, window_params = [{transform_indices = @transform_0, window_bounds = array<i64: 32, 128>}, {pipeline_mode = #tpu.pipeline_mode<synchronous>, transform_indices = @transform_1, window_bounds = array<i64: 1, 128>}, {pipeline_mode = #tpu.pipeline_mode<synchronous>, transform_indices = @transform_2, window_bounds = array<i64: 1, 128>}]} {
    %c0_i32 = arith.constant 0 : i32
    %0 = arith.cmpi eq, %arg0, %c0_i32 : i32
    %1 = arith.extui %0 : i1 to i32
    %c0_i32_0 = arith.constant 0 : i32
    %2 = arith.cmpi ne, %1, %c0_i32_0 : i32
    scf.if %2 {
      %cst_11 = arith.constant 0.000000e+00 : f32
      %16 = vector.broadcast %cst_11 : f32 to vector<1x128xf32>
      %c0_12 = arith.constant 0 : index
      %c0_13 = arith.constant 0 : index
      %17 = vector.load %arg2[%c0_12, %c0_13] : memref<1x128xf32, #tpu.memory_space<vmem>>, vector<1x128xf32>
      tpu.vector_store %arg2[%c0_12, %c0_13], %16 {strides = array<i32>} : memref<1x128xf32, #tpu.memory_space<vmem>>, vector<1x128xf32>,
      %cst_14 = arith.constant 0.000000e+00 : f32
      %18 = vector.broadcast %cst_14 : f32 to vector<1x128xf32>
      %c0_15 = arith.constant 0 : index
      %c0_16 = arith.constant 0 : index
      %19 = vector.load %arg3[%c0_15, %c0_16] : memref<1x128xf32, #tpu.memory_space<vmem>>, vector<1x128xf32>
      tpu.vector_store %arg3[%c0_15, %c0_16], %18 {strides = array<i32>} : memref<1x128xf32, #tpu.memory_space<vmem>>, vector<1x128xf32>,
    } else {
    }
    %c0 = arith.constant 0 : index
    %c0_1 = arith.constant 0 : index
    %3 = vector.load %arg1[%c0, %c0_1] : memref<32x128xbf16, #tpu.memory_space<vmem>>, vector<32x128xbf16>
    %4 = arith.extf %3 : vector<32x128xbf16> to vector<32x128xf32>
    %c0_2 = arith.constant 0 : index
    %c0_3 = arith.constant 0 : index
    %5 = vector.load %arg2[%c0_2, %c0_3] : memref<1x128xf32, #tpu.memory_space<vmem>>, vector<1x128xf32>
    %cst = arith.constant dense<0.000000e+00> : vector<128xf32>
    %6 = vector.multi_reduction <add>, %4, %cst [0] : vector<32x128xf32> to vector<128xf32>
    %7 = vector.shape_cast %6 : vector<128xf32> to vector<1x128xf32>
    %8 = arith.addf %5, %7 : vector<1x128xf32>
    %c0_4 = arith.constant 0 : index
    %c0_5 = arith.constant 0 : index
    %9 = vector.load %arg2[%c0_4, %c0_5] : memref<1x128xf32, #tpu.memory_space<vmem>>, vector<1x128xf32>
    tpu.vector_store %arg2[%c0_4, %c0_5], %8 {strides = array<i32>} : memref<1x128xf32, #tpu.memory_space<vmem>>, vector<1x128xf32>,
    %c0_6 = arith.constant 0 : index
    %c0_7 = arith.constant 0 : index
    %10 = vector.load %arg3[%c0_6, %c0_7] : memref<1x128xf32, #tpu.memory_space<vmem>>, vector<1x128xf32>
    %11 = arith.mulf %4, %4 : vector<32x128xf32>
    %cst_8 = arith.constant dense<0.000000e+00> : vector<128xf32>
    %12 = vector.multi_reduction <add>, %11, %cst_8 [0] : vector<32x128xf32> to vector<128xf32>
    %13 = vector.shape_cast %12 : vector<128xf32> to vector<1x128xf32>
    %14 = arith.addf %10, %13 : vector<1x128xf32>
    %c0_9 = arith.constant 0 : index
    %c0_10 = arith.constant 0 : index
    %15 = vector.load %arg3[%c0_9, %c0_10] : memref<1x128xf32, #tpu.memory_space<vmem>>, vector<1x128xf32>
    tpu.vector_store %arg3[%c0_9, %c0_10], %14 {strides = array<i32>} : memref<1x128xf32, #tpu.memory_space<vmem>>, vector<1x128xf32>,
    return
  }
  func.func @transform_0(%arg0: i32) -> (i32, i32) {
    %c0_i32 = arith.constant 0 : i32
    %c0_i32_0 = arith.constant 0 : i32
    return %arg0, %c0_i32 : i32, i32
  }
  func.func @transform_1(%arg0: i32) -> (i32, i32) {
    %c0_i32 = arith.constant 0 : i32
    %c0_i32_0 = arith.constant 0 : i32
    %c0_i32_1 = arith.constant 0 : i32
    return %c0_i32, %c0_i32_0 : i32, i32
  }
  func.func @transform_2(%arg0: i32) -> (i32, i32) {
    %c0_i32 = arith.constant 0 : i32
    %c0_i32_0 = arith.constant 0 : i32
    %c0_i32_1 = arith.constant 0 : i32
    return %c0_i32, %c0_i32_0 : i32, i32
  }
}

module attributes {stable_mosaic.version = 11 : i64} {
  func.func @_matmul_kernel(%arg0: i32, %arg1: i32, %arg2: i32, %arg3: memref<32x128xbf16, #tpu.memory_space<vmem>>, %arg4: memref<128x128xbf16, #tpu.memory_space<vmem>>, %arg5: memref<1x128xf32, #tpu.memory_space<vmem>>, %arg6: memref<32x128xbf16, #tpu.memory_space<vmem>>, %arg7: memref<32x128xf32, #tpu.memory_space<vmem>>) attributes {dimension_semantics = [#tpu.dimension_semantics<parallel>, #tpu.dimension_semantics<parallel>, #tpu.dimension_semantics<arbitrary>], iteration_bounds = array<i64: 1, 1, 1>, scalar_prefetch = 0 : i64, scratch_operands = 1 : i64, tpu.core_type = #tpu.core_type<tc>, window_params = [{transform_indices = @transform_0, window_bounds = array<i64: 32, 128>}, {transform_indices = @transform_1, window_bounds = array<i64: 128, 128>}, {transform_indices = @transform_2, window_bounds = array<i64: 1, 128>}, {transform_indices = @transform_3, window_bounds = array<i64: 32, 128>}]} {
    %c0_i32 = arith.constant 0 : i32
    %0 = arith.cmpi eq, %arg2, %c0_i32 : i32
    %1 = arith.extui %0 : i1 to i32
    %c0_i32_0 = arith.constant 0 : i32
    %2 = arith.cmpi ne, %1, %c0_i32_0 : i32
    scf.if %2 {
      %cst_12 = arith.constant 0.000000e+00 : f32
      %17 = vector.broadcast %cst_12 : f32 to vector<32x128xf32>
      %c0_13 = arith.constant 0 : index
      %c0_14 = arith.constant 0 : index
      %18 = vector.load %arg7[%c0_13, %c0_14] : memref<32x128xf32, #tpu.memory_space<vmem>>, vector<32x128xf32>
      tpu.vector_store %arg7[%c0_13, %c0_14], %17 {strides = array<i32>} : memref<32x128xf32, #tpu.memory_space<vmem>>, vector<32x128xf32>,
    } else {
    }
    %c0 = arith.constant 0 : index
    %c0_1 = arith.constant 0 : index
    %3 = vector.load %arg3[%c0, %c0_1] : memref<32x128xbf16, #tpu.memory_space<vmem>>, vector<32x128xbf16>
    %cst = arith.constant 0.000000e+00 : bf16
    %4 = vector.broadcast %cst : bf16 to vector<32x128xbf16>
    %5 = arith.cmpf ogt, %3, %4 : vector<32x128xbf16>
    %cst_2 = arith.constant 2.001950e-01 : bf16
    %6 = vector.broadcast %cst_2 : bf16 to vector<32x128xbf16>
    %7 = arith.mulf %3, %6 : vector<32x128xbf16>
    %8 = arith.select %5, %3, %7 : vector<32x128xi1>, vector<32x128xbf16>
    %c0_3 = arith.constant 0 : index
    %c0_4 = arith.constant 0 : index
    %9 = vector.load %arg7[%c0_3, %c0_4] : memref<32x128xf32, #tpu.memory_space<vmem>>, vector<32x128xf32>
    %c0_5 = arith.constant 0 : index
    %c0_6 = arith.constant 0 : index
    %10 = vector.load %arg4[%c0_5, %c0_6] : memref<128x128xbf16, #tpu.memory_space<vmem>>, vector<128x128xbf16>
    %cst_7 = arith.constant dense<0.000000e+00> : vector<32x128xf32>
    %11 = tpu.matmul %8, %10, %cst_7 {dimension_numbers = #tpu.dot_dimension_numbers<[1], [0], [0], [1], [0, 0, 1, 1], [], []>} : vector<32x128xbf16>, vector<128x128xbf16>, vector<32x128xf32> -> vector<32x128xf32>
    %12 = arith.addf %9, %11 : vector<32x128xf32>
    %c0_8 = arith.constant 0 : index
    %c0_9 = arith.constant 0 : index
    %13 = vector.load %arg7[%c0_8, %c0_9] : memref<32x128xf32, #tpu.memory_space<vmem>>, vector<32x128xf32>
    tpu.vector_store %arg7[%c0_8, %c0_9], %12 {strides = array<i32>} : memref<32x128xf32, #tpu.memory_space<vmem>>, vector<32x128xf32>,
    %c0_i32_10 = arith.constant 0 : i32
    %14 = arith.cmpi eq, %arg2, %c0_i32_10 : i32
    %15 = arith.extui %14 : i1 to i32
    %c0_i32_11 = arith.constant 0 : i32
    %16 = arith.cmpi ne, %15, %c0_i32_11 : i32
    scf.if %16 {
      %c0_12 = arith.constant 0 : index
      %c0_13 = arith.constant 0 : index
      %17 = vector.load %arg7[%c0_12, %c0_13] : memref<32x128xf32, #tpu.memory_space<vmem>>, vector<32x128xf32>
      %c0_14 = arith.constant 0 : index
      %c0_15 = arith.constant 0 : index
      %18 = vector.load %arg5[%c0_14, %c0_15] : memref<1x128xf32, #tpu.memory_space<vmem>>, vector<1x128xf32>
      %19 = vector.broadcast %18 : vector<1x128xf32> to vector<32x128xf32>
      %20 = arith.addf %17, %19 : vector<32x128xf32>
      %21 = arith.truncf %20 : vector<32x128xf32> to vector<32x128xbf16>
      %c0_16 = arith.constant 0 : index
      %c0_17 = arith.constant 0 : index
      %22 = vector.load %arg6[%c0_16, %c0_17] : memref<32x128xbf16, #tpu.memory_space<vmem>>, vector<32x128xbf16>
      tpu.vector_store %arg6[%c0_16, %c0_17], %21 {strides = array<i32>} : memref<32x128xbf16, #tpu.memory_space<vmem>>, vector<32x128xbf16>,
    } else {
    }
    return
  }
  func.func @transform_0(%arg0: i32, %arg1: i32, %arg2: i32) -> (i32, i32) {
    %c0_i32 = arith.constant 0 : i32
    return %arg0, %arg2 : i32, i32
  }
  func.func @transform_1(%arg0: i32, %arg1: i32, %arg2: i32) -> (i32, i32) {
    %c0_i32 = arith.constant 0 : i32
    return %arg2, %arg1 : i32, i32
  }
  func.func @transform_2(%arg0: i32, %arg1: i32, %arg2: i32) -> (i32, i32) {
    %c0_i32 = arith.constant 0 : i32
    %c0_i32_0 = arith.constant 0 : i32
    return %c0_i32, %arg1 : i32, i32
  }
  func.func @transform_3(%arg0: i32, %arg1: i32, %arg2: i32) -> (i32, i32) {
    %c0_i32 = arith.constant 0 : i32
    return %arg0, %arg1 : i32, i32
  }
}

module attributes {stable_mosaic.version = 11 : i64} {
  func.func @_bn_apply_kernel(%arg0: i32, %arg1: memref<32x128xbf16, #tpu.memory_space<vmem>>, %arg2: memref<1x128xf32, #tpu.memory_space<vmem>>, %arg3: memref<1x128xf32, #tpu.memory_space<vmem>>, %arg4: memref<32x128xbf16, #tpu.memory_space<vmem>>) attributes {dimension_semantics = [#tpu.dimension_semantics<parallel>], iteration_bounds = array<i64: 1>, scalar_prefetch = 0 : i64, scratch_operands = 0 : i64, tpu.core_type = #tpu.core_type<tc>, window_params = [{transform_indices = @transform_0, window_bounds = array<i64: 32, 128>}, {pipeline_mode = #tpu.pipeline_mode<synchronous>, transform_indices = @transform_1, window_bounds = array<i64: 1, 128>}, {pipeline_mode = #tpu.pipeline_mode<synchronous>, transform_indices = @transform_2, window_bounds = array<i64: 1, 128>}, {transform_indices = @transform_3, window_bounds = array<i64: 32, 128>}]} {
    %c0 = arith.constant 0 : index
    %c0_0 = arith.constant 0 : index
    %0 = vector.load %arg1[%c0, %c0_0] : memref<32x128xbf16, #tpu.memory_space<vmem>>, vector<32x128xbf16>
    %1 = arith.extf %0 : vector<32x128xbf16> to vector<32x128xf32>
    %c0_1 = arith.constant 0 : index
    %c0_2 = arith.constant 0 : index
    %2 = vector.load %arg2[%c0_1, %c0_2] : memref<1x128xf32, #tpu.memory_space<vmem>>, vector<1x128xf32>
    %3 = vector.broadcast %2 : vector<1x128xf32> to vector<32x128xf32>
    %4 = arith.mulf %1, %3 : vector<32x128xf32>
    %c0_3 = arith.constant 0 : index
    %c0_4 = arith.constant 0 : index
    %5 = vector.load %arg3[%c0_3, %c0_4] : memref<1x128xf32, #tpu.memory_space<vmem>>, vector<1x128xf32>
    %6 = vector.broadcast %5 : vector<1x128xf32> to vector<32x128xf32>
    %7 = arith.addf %4, %6 : vector<32x128xf32>
    %8 = arith.truncf %7 : vector<32x128xf32> to vector<32x128xbf16>
    %c0_5 = arith.constant 0 : index
    %c0_6 = arith.constant 0 : index
    %9 = vector.load %arg4[%c0_5, %c0_6] : memref<32x128xbf16, #tpu.memory_space<vmem>>, vector<32x128xbf16>
    tpu.vector_store %arg4[%c0_5, %c0_6], %8 {strides = array<i32>} : memref<32x128xbf16, #tpu.memory_space<vmem>>, vector<32x128xbf16>,
    return
  }
  func.func @transform_0(%arg0: i32) -> (i32, i32) {
    %c0_i32 = arith.constant 0 : i32
    %c0_i32_0 = arith.constant 0 : i32
    return %arg0, %c0_i32 : i32, i32
  }
  func.func @transform_1(%arg0: i32) -> (i32, i32) {
    %c0_i32 = arith.constant 0 : i32
    %c0_i32_0 = arith.constant 0 : i32
    %c0_i32_1 = arith.constant 0 : i32
    return %c0_i32, %c0_i32_0 : i32, i32
  }
  func.func @transform_2(%arg0: i32) -> (i32, i32) {
    %c0_i32 = arith.constant 0 : i32
    %c0_i32_0 = arith.constant 0 : i32
    %c0_i32_1 = arith.constant 0 : i32
    return %c0_i32, %c0_i32_0 : i32, i32
  }
  func.func @transform_3(%arg0: i32) -> (i32, i32) {
    %c0_i32 = arith.constant 0 : i32
    %c0_i32_0 = arith.constant 0 : i32
    return %arg0, %c0_i32 : i32, i32
  }
}

module attributes {stable_mosaic.version = 11 : i64} {
  func.func @_matmul_kernel(%arg0: i32, %arg1: i32, %arg2: i32, %arg3: memref<8x256xbf16, #tpu.memory_space<vmem>>, %arg4: memref<256x128xbf16, #tpu.memory_space<vmem>>, %arg5: memref<1x128xf32, #tpu.memory_space<vmem>>, %arg6: memref<8x128xbf16, #tpu.memory_space<vmem>>, %arg7: memref<8x128xf32, #tpu.memory_space<vmem>>) attributes {dimension_semantics = [#tpu.dimension_semantics<parallel>, #tpu.dimension_semantics<parallel>, #tpu.dimension_semantics<arbitrary>], iteration_bounds = array<i64: 1, 1, 1>, scalar_prefetch = 0 : i64, scratch_operands = 1 : i64, tpu.core_type = #tpu.core_type<tc>, window_params = [{transform_indices = @transform_0, window_bounds = array<i64: 8, 256>}, {transform_indices = @transform_1, window_bounds = array<i64: 256, 128>}, {transform_indices = @transform_2, window_bounds = array<i64: 1, 128>}, {transform_indices = @transform_3, window_bounds = array<i64: 8, 128>}]} {
    %c0_i32 = arith.constant 0 : i32
    %0 = arith.cmpi eq, %arg2, %c0_i32 : i32
    %1 = arith.extui %0 : i1 to i32
    %c0_i32_0 = arith.constant 0 : i32
    %2 = arith.cmpi ne, %1, %c0_i32_0 : i32
    scf.if %2 {
      %cst_12 = arith.constant 0.000000e+00 : f32
      %17 = vector.broadcast %cst_12 : f32 to vector<8x128xf32>
      %c0_13 = arith.constant 0 : index
      %c0_14 = arith.constant 0 : index
      %18 = vector.load %arg7[%c0_13, %c0_14] : memref<8x128xf32, #tpu.memory_space<vmem>>, vector<8x128xf32>
      tpu.vector_store %arg7[%c0_13, %c0_14], %17 {strides = array<i32>} : memref<8x128xf32, #tpu.memory_space<vmem>>, vector<8x128xf32>,
    } else {
    }
    %c0 = arith.constant 0 : index
    %c0_1 = arith.constant 0 : index
    %3 = vector.load %arg3[%c0, %c0_1] : memref<8x256xbf16, #tpu.memory_space<vmem>>, vector<8x256xbf16>
    %cst = arith.constant 0.000000e+00 : bf16
    %4 = vector.broadcast %cst : bf16 to vector<8x256xbf16>
    %5 = arith.cmpf ogt, %3, %4 : vector<8x256xbf16>
    %cst_2 = arith.constant 2.001950e-01 : bf16
    %6 = vector.broadcast %cst_2 : bf16 to vector<8x256xbf16>
    %7 = arith.mulf %3, %6 : vector<8x256xbf16>
    %8 = arith.select %5, %3, %7 : vector<8x256xi1>, vector<8x256xbf16>
    %c0_3 = arith.constant 0 : index
    %c0_4 = arith.constant 0 : index
    %9 = vector.load %arg7[%c0_3, %c0_4] : memref<8x128xf32, #tpu.memory_space<vmem>>, vector<8x128xf32>
    %c0_5 = arith.constant 0 : index
    %c0_6 = arith.constant 0 : index
    %10 = vector.load %arg4[%c0_5, %c0_6] : memref<256x128xbf16, #tpu.memory_space<vmem>>, vector<256x128xbf16>
    %cst_7 = arith.constant dense<0.000000e+00> : vector<8x128xf32>
    %11 = tpu.matmul %8, %10, %cst_7 {dimension_numbers = #tpu.dot_dimension_numbers<[1], [0], [0], [1], [0, 0, 1, 1], [], []>} : vector<8x256xbf16>, vector<256x128xbf16>, vector<8x128xf32> -> vector<8x128xf32>
    %12 = arith.addf %9, %11 : vector<8x128xf32>
    %c0_8 = arith.constant 0 : index
    %c0_9 = arith.constant 0 : index
    %13 = vector.load %arg7[%c0_8, %c0_9] : memref<8x128xf32, #tpu.memory_space<vmem>>, vector<8x128xf32>
    tpu.vector_store %arg7[%c0_8, %c0_9], %12 {strides = array<i32>} : memref<8x128xf32, #tpu.memory_space<vmem>>, vector<8x128xf32>,
    %c0_i32_10 = arith.constant 0 : i32
    %14 = arith.cmpi eq, %arg2, %c0_i32_10 : i32
    %15 = arith.extui %14 : i1 to i32
    %c0_i32_11 = arith.constant 0 : i32
    %16 = arith.cmpi ne, %15, %c0_i32_11 : i32
    scf.if %16 {
      %c0_12 = arith.constant 0 : index
      %c0_13 = arith.constant 0 : index
      %17 = vector.load %arg7[%c0_12, %c0_13] : memref<8x128xf32, #tpu.memory_space<vmem>>, vector<8x128xf32>
      %c0_14 = arith.constant 0 : index
      %c0_15 = arith.constant 0 : index
      %18 = vector.load %arg5[%c0_14, %c0_15] : memref<1x128xf32, #tpu.memory_space<vmem>>, vector<1x128xf32>
      %19 = vector.broadcast %18 : vector<1x128xf32> to vector<8x128xf32>
      %20 = arith.addf %17, %19 : vector<8x128xf32>
      %21 = arith.truncf %20 : vector<8x128xf32> to vector<8x128xbf16>
      %c0_16 = arith.constant 0 : index
      %c0_17 = arith.constant 0 : index
      %22 = vector.load %arg6[%c0_16, %c0_17] : memref<8x128xbf16, #tpu.memory_space<vmem>>, vector<8x128xbf16>
      tpu.vector_store %arg6[%c0_16, %c0_17], %21 {strides = array<i32>} : memref<8x128xbf16, #tpu.memory_space<vmem>>, vector<8x128xbf16>,
    } else {
    }
    return
  }
  func.func @transform_0(%arg0: i32, %arg1: i32, %arg2: i32) -> (i32, i32) {
    %c0_i32 = arith.constant 0 : i32
    return %arg0, %arg2 : i32, i32
  }
  func.func @transform_1(%arg0: i32, %arg1: i32, %arg2: i32) -> (i32, i32) {
    %c0_i32 = arith.constant 0 : i32
    return %arg2, %arg1 : i32, i32
  }
  func.func @transform_2(%arg0: i32, %arg1: i32, %arg2: i32) -> (i32, i32) {
    %c0_i32 = arith.constant 0 : i32
    %c0_i32_0 = arith.constant 0 : i32
    return %c0_i32, %arg1 : i32, i32
  }
  func.func @transform_3(%arg0: i32, %arg1: i32, %arg2: i32) -> (i32, i32) {
    %c0_i32 = arith.constant 0 : i32
    return %arg0, %arg1 : i32, i32
  }
}

module attributes {stable_mosaic.version = 11 : i64} {
  func.func @_matmul_kernel(%arg0: i32, %arg1: i32, %arg2: i32, %arg3: memref<8x128xbf16, #tpu.memory_space<vmem>>, %arg4: memref<128x128xbf16, #tpu.memory_space<vmem>>, %arg5: memref<1x128xf32, #tpu.memory_space<vmem>>, %arg6: memref<8x128xbf16, #tpu.memory_space<vmem>>, %arg7: memref<8x128xf32, #tpu.memory_space<vmem>>) attributes {dimension_semantics = [#tpu.dimension_semantics<parallel>, #tpu.dimension_semantics<parallel>, #tpu.dimension_semantics<arbitrary>], iteration_bounds = array<i64: 1, 1, 3>, scalar_prefetch = 0 : i64, scratch_operands = 1 : i64, tpu.core_type = #tpu.core_type<tc>, window_params = [{transform_indices = @transform_0, window_bounds = array<i64: 8, 128>}, {transform_indices = @transform_1, window_bounds = array<i64: 128, 128>}, {transform_indices = @transform_2, window_bounds = array<i64: 1, 128>}, {transform_indices = @transform_3, window_bounds = array<i64: 8, 128>}]} {
    %c0_i32 = arith.constant 0 : i32
    %0 = arith.cmpi eq, %arg2, %c0_i32 : i32
    %1 = arith.extui %0 : i1 to i32
    %c0_i32_0 = arith.constant 0 : i32
    %2 = arith.cmpi ne, %1, %c0_i32_0 : i32
    scf.if %2 {
      %cst_10 = arith.constant 0.000000e+00 : f32
      %14 = vector.broadcast %cst_10 : f32 to vector<8x128xf32>
      %c0_11 = arith.constant 0 : index
      %c0_12 = arith.constant 0 : index
      %15 = vector.load %arg7[%c0_11, %c0_12] : memref<8x128xf32, #tpu.memory_space<vmem>>, vector<8x128xf32>
      tpu.vector_store %arg7[%c0_11, %c0_12], %14 {strides = array<i32>} : memref<8x128xf32, #tpu.memory_space<vmem>>, vector<8x128xf32>,
    } else {
    }
    %c0 = arith.constant 0 : index
    %c0_1 = arith.constant 0 : index
    %3 = vector.load %arg3[%c0, %c0_1] : memref<8x128xbf16, #tpu.memory_space<vmem>>, vector<8x128xbf16>
    %cst = arith.constant 0.000000e+00 : bf16
    %4 = vector.broadcast %cst : bf16 to vector<8x128xbf16>
    %5 = arith.maximumf %3, %4 : vector<8x128xbf16>
    %c0_2 = arith.constant 0 : index
    %c0_3 = arith.constant 0 : index
    %6 = vector.load %arg7[%c0_2, %c0_3] : memref<8x128xf32, #tpu.memory_space<vmem>>, vector<8x128xf32>
    %c0_4 = arith.constant 0 : index
    %c0_5 = arith.constant 0 : index
    %7 = vector.load %arg4[%c0_4, %c0_5] : memref<128x128xbf16, #tpu.memory_space<vmem>>, vector<128x128xbf16>
    %cst_6 = arith.constant dense<0.000000e+00> : vector<8x128xf32>
    %8 = tpu.matmul %5, %7, %cst_6 {dimension_numbers = #tpu.dot_dimension_numbers<[1], [0], [0], [1], [0, 0, 1, 1], [], []>} : vector<8x128xbf16>, vector<128x128xbf16>, vector<8x128xf32> -> vector<8x128xf32>
    %9 = arith.addf %6, %8 : vector<8x128xf32>
    %c0_7 = arith.constant 0 : index
    %c0_8 = arith.constant 0 : index
    %10 = vector.load %arg7[%c0_7, %c0_8] : memref<8x128xf32, #tpu.memory_space<vmem>>, vector<8x128xf32>
    tpu.vector_store %arg7[%c0_7, %c0_8], %9 {strides = array<i32>} : memref<8x128xf32, #tpu.memory_space<vmem>>, vector<8x128xf32>,
    %c2_i32 = arith.constant 2 : i32
    %11 = arith.cmpi eq, %arg2, %c2_i32 : i32
    %12 = arith.extui %11 : i1 to i32
    %c0_i32_9 = arith.constant 0 : i32
    %13 = arith.cmpi ne, %12, %c0_i32_9 : i32
    scf.if %13 {
      %c0_10 = arith.constant 0 : index
      %c0_11 = arith.constant 0 : index
      %14 = vector.load %arg7[%c0_10, %c0_11] : memref<8x128xf32, #tpu.memory_space<vmem>>, vector<8x128xf32>
      %c0_12 = arith.constant 0 : index
      %c0_13 = arith.constant 0 : index
      %15 = vector.load %arg5[%c0_12, %c0_13] : memref<1x128xf32, #tpu.memory_space<vmem>>, vector<1x128xf32>
      %16 = vector.broadcast %15 : vector<1x128xf32> to vector<8x128xf32>
      %17 = arith.addf %14, %16 : vector<8x128xf32>
      %18 = arith.truncf %17 : vector<8x128xf32> to vector<8x128xbf16>
      %c0_14 = arith.constant 0 : index
      %c0_15 = arith.constant 0 : index
      %19 = vector.load %arg6[%c0_14, %c0_15] : memref<8x128xbf16, #tpu.memory_space<vmem>>, vector<8x128xbf16>
      tpu.vector_store %arg6[%c0_14, %c0_15], %18 {strides = array<i32>} : memref<8x128xbf16, #tpu.memory_space<vmem>>, vector<8x128xbf16>,
    } else {
    }
    return
  }
  func.func @transform_0(%arg0: i32, %arg1: i32, %arg2: i32) -> (i32, i32) {
    %c0_i32 = arith.constant 0 : i32
    return %arg0, %arg2 : i32, i32
  }
  func.func @transform_1(%arg0: i32, %arg1: i32, %arg2: i32) -> (i32, i32) {
    %c0_i32 = arith.constant 0 : i32
    return %arg2, %arg1 : i32, i32
  }
  func.func @transform_2(%arg0: i32, %arg1: i32, %arg2: i32) -> (i32, i32) {
    %c0_i32 = arith.constant 0 : i32
    %c0_i32_0 = arith.constant 0 : i32
    return %c0_i32, %arg1 : i32, i32
  }
  func.func @transform_3(%arg0: i32, %arg1: i32, %arg2: i32) -> (i32, i32) {
    %c0_i32 = arith.constant 0 : i32
    return %arg0, %arg1 : i32, i32
  }
}

module attributes {stable_mosaic.version = 11 : i64} {
  func.func @_matmul_kernel(%arg0: i32, %arg1: i32, %arg2: i32, %arg3: memref<32x128xbf16, #tpu.memory_space<vmem>>, %arg4: memref<128x128xbf16, #tpu.memory_space<vmem>>, %arg5: memref<1x128xf32, #tpu.memory_space<vmem>>, %arg6: memref<32x128xbf16, #tpu.memory_space<vmem>>, %arg7: memref<32x128xf32, #tpu.memory_space<vmem>>) attributes {dimension_semantics = [#tpu.dimension_semantics<parallel>, #tpu.dimension_semantics<parallel>, #tpu.dimension_semantics<arbitrary>], iteration_bounds = array<i64: 1, 1, 3>, scalar_prefetch = 0 : i64, scratch_operands = 1 : i64, tpu.core_type = #tpu.core_type<tc>, window_params = [{transform_indices = @transform_0, window_bounds = array<i64: 32, 128>}, {transform_indices = @transform_1, window_bounds = array<i64: 128, 128>}, {transform_indices = @transform_2, window_bounds = array<i64: 1, 128>}, {transform_indices = @transform_3, window_bounds = array<i64: 32, 128>}]} {
    %c0_i32 = arith.constant 0 : i32
    %0 = arith.cmpi eq, %arg2, %c0_i32 : i32
    %1 = arith.extui %0 : i1 to i32
    %c0_i32_0 = arith.constant 0 : i32
    %2 = arith.cmpi ne, %1, %c0_i32_0 : i32
    scf.if %2 {
      %cst_10 = arith.constant 0.000000e+00 : f32
      %14 = vector.broadcast %cst_10 : f32 to vector<32x128xf32>
      %c0_11 = arith.constant 0 : index
      %c0_12 = arith.constant 0 : index
      %15 = vector.load %arg7[%c0_11, %c0_12] : memref<32x128xf32, #tpu.memory_space<vmem>>, vector<32x128xf32>
      tpu.vector_store %arg7[%c0_11, %c0_12], %14 {strides = array<i32>} : memref<32x128xf32, #tpu.memory_space<vmem>>, vector<32x128xf32>,
    } else {
    }
    %c0 = arith.constant 0 : index
    %c0_1 = arith.constant 0 : index
    %3 = vector.load %arg3[%c0, %c0_1] : memref<32x128xbf16, #tpu.memory_space<vmem>>, vector<32x128xbf16>
    %cst = arith.constant 0.000000e+00 : bf16
    %4 = vector.broadcast %cst : bf16 to vector<32x128xbf16>
    %5 = arith.maximumf %3, %4 : vector<32x128xbf16>
    %c0_2 = arith.constant 0 : index
    %c0_3 = arith.constant 0 : index
    %6 = vector.load %arg7[%c0_2, %c0_3] : memref<32x128xf32, #tpu.memory_space<vmem>>, vector<32x128xf32>
    %c0_4 = arith.constant 0 : index
    %c0_5 = arith.constant 0 : index
    %7 = vector.load %arg4[%c0_4, %c0_5] : memref<128x128xbf16, #tpu.memory_space<vmem>>, vector<128x128xbf16>
    %cst_6 = arith.constant dense<0.000000e+00> : vector<32x128xf32>
    %8 = tpu.matmul %5, %7, %cst_6 {dimension_numbers = #tpu.dot_dimension_numbers<[1], [0], [0], [1], [0, 0, 1, 1], [], []>} : vector<32x128xbf16>, vector<128x128xbf16>, vector<32x128xf32> -> vector<32x128xf32>
    %9 = arith.addf %6, %8 : vector<32x128xf32>
    %c0_7 = arith.constant 0 : index
    %c0_8 = arith.constant 0 : index
    %10 = vector.load %arg7[%c0_7, %c0_8] : memref<32x128xf32, #tpu.memory_space<vmem>>, vector<32x128xf32>
    tpu.vector_store %arg7[%c0_7, %c0_8], %9 {strides = array<i32>} : memref<32x128xf32, #tpu.memory_space<vmem>>, vector<32x128xf32>,
    %c2_i32 = arith.constant 2 : i32
    %11 = arith.cmpi eq, %arg2, %c2_i32 : i32
    %12 = arith.extui %11 : i1 to i32
    %c0_i32_9 = arith.constant 0 : i32
    %13 = arith.cmpi ne, %12, %c0_i32_9 : i32
    scf.if %13 {
      %c0_10 = arith.constant 0 : index
      %c0_11 = arith.constant 0 : index
      %14 = vector.load %arg7[%c0_10, %c0_11] : memref<32x128xf32, #tpu.memory_space<vmem>>, vector<32x128xf32>
      %c0_12 = arith.constant 0 : index
      %c0_13 = arith.constant 0 : index
      %15 = vector.load %arg5[%c0_12, %c0_13] : memref<1x128xf32, #tpu.memory_space<vmem>>, vector<1x128xf32>
      %16 = vector.broadcast %15 : vector<1x128xf32> to vector<32x128xf32>
      %17 = arith.addf %14, %16 : vector<32x128xf32>
      %18 = arith.truncf %17 : vector<32x128xf32> to vector<32x128xbf16>
      %c0_14 = arith.constant 0 : index
      %c0_15 = arith.constant 0 : index
      %19 = vector.load %arg6[%c0_14, %c0_15] : memref<32x128xbf16, #tpu.memory_space<vmem>>, vector<32x128xbf16>
      tpu.vector_store %arg6[%c0_14, %c0_15], %18 {strides = array<i32>} : memref<32x128xbf16, #tpu.memory_space<vmem>>, vector<32x128xbf16>,
    } else {
    }
    return
  }
  func.func @transform_0(%arg0: i32, %arg1: i32, %arg2: i32) -> (i32, i32) {
    %c0_i32 = arith.constant 0 : i32
    return %arg0, %arg2 : i32, i32
  }
  func.func @transform_1(%arg0: i32, %arg1: i32, %arg2: i32) -> (i32, i32) {
    %c0_i32 = arith.constant 0 : i32
    return %arg2, %arg1 : i32, i32
  }
  func.func @transform_2(%arg0: i32, %arg1: i32, %arg2: i32) -> (i32, i32) {
    %c0_i32 = arith.constant 0 : i32
    %c0_i32_0 = arith.constant 0 : i32
    return %c0_i32, %arg1 : i32, i32
  }
  func.func @transform_3(%arg0: i32, %arg1: i32, %arg2: i32) -> (i32, i32) {
    %c0_i32 = arith.constant 0 : i32
    return %arg0, %arg1 : i32, i32
  }
}

module attributes {stable_mosaic.version = 11 : i64} {
  func.func @_bn_stats_kernel(%arg0: i32, %arg1: memref<128x128xbf16, #tpu.memory_space<vmem>>, %arg2: memref<1x128xf32, #tpu.memory_space<vmem>>, %arg3: memref<1x128xf32, #tpu.memory_space<vmem>>) attributes {dimension_semantics = [#tpu.dimension_semantics<arbitrary>], iteration_bounds = array<i64: 1>, scalar_prefetch = 0 : i64, scratch_operands = 0 : i64, tpu.core_type = #tpu.core_type<tc>, window_params = [{transform_indices = @transform_0, window_bounds = array<i64: 128, 128>}, {pipeline_mode = #tpu.pipeline_mode<synchronous>, transform_indices = @transform_1, window_bounds = array<i64: 1, 128>}, {pipeline_mode = #tpu.pipeline_mode<synchronous>, transform_indices = @transform_2, window_bounds = array<i64: 1, 128>}]} {
    %c0_i32 = arith.constant 0 : i32
    %0 = arith.cmpi eq, %arg0, %c0_i32 : i32
    %1 = arith.extui %0 : i1 to i32
    %c0_i32_0 = arith.constant 0 : i32
    %2 = arith.cmpi ne, %1, %c0_i32_0 : i32
    scf.if %2 {
      %cst_11 = arith.constant 0.000000e+00 : f32
      %16 = vector.broadcast %cst_11 : f32 to vector<1x128xf32>
      %c0_12 = arith.constant 0 : index
      %c0_13 = arith.constant 0 : index
      %17 = vector.load %arg2[%c0_12, %c0_13] : memref<1x128xf32, #tpu.memory_space<vmem>>, vector<1x128xf32>
      tpu.vector_store %arg2[%c0_12, %c0_13], %16 {strides = array<i32>} : memref<1x128xf32, #tpu.memory_space<vmem>>, vector<1x128xf32>,
      %cst_14 = arith.constant 0.000000e+00 : f32
      %18 = vector.broadcast %cst_14 : f32 to vector<1x128xf32>
      %c0_15 = arith.constant 0 : index
      %c0_16 = arith.constant 0 : index
      %19 = vector.load %arg3[%c0_15, %c0_16] : memref<1x128xf32, #tpu.memory_space<vmem>>, vector<1x128xf32>
      tpu.vector_store %arg3[%c0_15, %c0_16], %18 {strides = array<i32>} : memref<1x128xf32, #tpu.memory_space<vmem>>, vector<1x128xf32>,
    } else {
    }
    %c0 = arith.constant 0 : index
    %c0_1 = arith.constant 0 : index
    %3 = vector.load %arg1[%c0, %c0_1] : memref<128x128xbf16, #tpu.memory_space<vmem>>, vector<128x128xbf16>
    %4 = arith.extf %3 : vector<128x128xbf16> to vector<128x128xf32>
    %c0_2 = arith.constant 0 : index
    %c0_3 = arith.constant 0 : index
    %5 = vector.load %arg2[%c0_2, %c0_3] : memref<1x128xf32, #tpu.memory_space<vmem>>, vector<1x128xf32>
    %cst = arith.constant dense<0.000000e+00> : vector<128xf32>
    %6 = vector.multi_reduction <add>, %4, %cst [0] : vector<128x128xf32> to vector<128xf32>
    %7 = vector.shape_cast %6 : vector<128xf32> to vector<1x128xf32>
    %8 = arith.addf %5, %7 : vector<1x128xf32>
    %c0_4 = arith.constant 0 : index
    %c0_5 = arith.constant 0 : index
    %9 = vector.load %arg2[%c0_4, %c0_5] : memref<1x128xf32, #tpu.memory_space<vmem>>, vector<1x128xf32>
    tpu.vector_store %arg2[%c0_4, %c0_5], %8 {strides = array<i32>} : memref<1x128xf32, #tpu.memory_space<vmem>>, vector<1x128xf32>,
    %c0_6 = arith.constant 0 : index
    %c0_7 = arith.constant 0 : index
    %10 = vector.load %arg3[%c0_6, %c0_7] : memref<1x128xf32, #tpu.memory_space<vmem>>, vector<1x128xf32>
    %11 = arith.mulf %4, %4 : vector<128x128xf32>
    %cst_8 = arith.constant dense<0.000000e+00> : vector<128xf32>
    %12 = vector.multi_reduction <add>, %11, %cst_8 [0] : vector<128x128xf32> to vector<128xf32>
    %13 = vector.shape_cast %12 : vector<128xf32> to vector<1x128xf32>
    %14 = arith.addf %10, %13 : vector<1x128xf32>
    %c0_9 = arith.constant 0 : index
    %c0_10 = arith.constant 0 : index
    %15 = vector.load %arg3[%c0_9, %c0_10] : memref<1x128xf32, #tpu.memory_space<vmem>>, vector<1x128xf32>
    tpu.vector_store %arg3[%c0_9, %c0_10], %14 {strides = array<i32>} : memref<1x128xf32, #tpu.memory_space<vmem>>, vector<1x128xf32>,
    return
  }
  func.func @transform_0(%arg0: i32) -> (i32, i32) {
    %c0_i32 = arith.constant 0 : i32
    %c0_i32_0 = arith.constant 0 : i32
    return %arg0, %c0_i32 : i32, i32
  }
  func.func @transform_1(%arg0: i32) -> (i32, i32) {
    %c0_i32 = arith.constant 0 : i32
    %c0_i32_0 = arith.constant 0 : i32
    %c0_i32_1 = arith.constant 0 : i32
    return %c0_i32, %c0_i32_0 : i32, i32
  }
  func.func @transform_2(%arg0: i32) -> (i32, i32) {
    %c0_i32 = arith.constant 0 : i32
    %c0_i32_0 = arith.constant 0 : i32
    %c0_i32_1 = arith.constant 0 : i32
    return %c0_i32, %c0_i32_0 : i32, i32
  }
}

module attributes {stable_mosaic.version = 11 : i64} {
  func.func @_bn_apply_kernel(%arg0: i32, %arg1: memref<128x128xbf16, #tpu.memory_space<vmem>>, %arg2: memref<1x128xf32, #tpu.memory_space<vmem>>, %arg3: memref<1x128xf32, #tpu.memory_space<vmem>>, %arg4: memref<128x128xbf16, #tpu.memory_space<vmem>>) attributes {dimension_semantics = [#tpu.dimension_semantics<parallel>], iteration_bounds = array<i64: 1>, scalar_prefetch = 0 : i64, scratch_operands = 0 : i64, tpu.core_type = #tpu.core_type<tc>, window_params = [{transform_indices = @transform_0, window_bounds = array<i64: 128, 128>}, {pipeline_mode = #tpu.pipeline_mode<synchronous>, transform_indices = @transform_1, window_bounds = array<i64: 1, 128>}, {pipeline_mode = #tpu.pipeline_mode<synchronous>, transform_indices = @transform_2, window_bounds = array<i64: 1, 128>}, {transform_indices = @transform_3, window_bounds = array<i64: 128, 128>}]} {
    %c0 = arith.constant 0 : index
    %c0_0 = arith.constant 0 : index
    %0 = vector.load %arg1[%c0, %c0_0] : memref<128x128xbf16, #tpu.memory_space<vmem>>, vector<128x128xbf16>
    %1 = arith.extf %0 : vector<128x128xbf16> to vector<128x128xf32>
    %c0_1 = arith.constant 0 : index
    %c0_2 = arith.constant 0 : index
    %2 = vector.load %arg2[%c0_1, %c0_2] : memref<1x128xf32, #tpu.memory_space<vmem>>, vector<1x128xf32>
    %3 = vector.broadcast %2 : vector<1x128xf32> to vector<128x128xf32>
    %4 = arith.mulf %1, %3 : vector<128x128xf32>
    %c0_3 = arith.constant 0 : index
    %c0_4 = arith.constant 0 : index
    %5 = vector.load %arg3[%c0_3, %c0_4] : memref<1x128xf32, #tpu.memory_space<vmem>>, vector<1x128xf32>
    %6 = vector.broadcast %5 : vector<1x128xf32> to vector<128x128xf32>
    %7 = arith.addf %4, %6 : vector<128x128xf32>
    %8 = arith.truncf %7 : vector<128x128xf32> to vector<128x128xbf16>
    %c0_5 = arith.constant 0 : index
    %c0_6 = arith.constant 0 : index
    %9 = vector.load %arg4[%c0_5, %c0_6] : memref<128x128xbf16, #tpu.memory_space<vmem>>, vector<128x128xbf16>
    tpu.vector_store %arg4[%c0_5, %c0_6], %8 {strides = array<i32>} : memref<128x128xbf16, #tpu.memory_space<vmem>>, vector<128x128xbf16>,
    return
  }
  func.func @transform_0(%arg0: i32) -> (i32, i32) {
    %c0_i32 = arith.constant 0 : i32
    %c0_i32_0 = arith.constant 0 : i32
    return %arg0, %c0_i32 : i32, i32
  }
  func.func @transform_1(%arg0: i32) -> (i32, i32) {
    %c0_i32 = arith.constant 0 : i32
    %c0_i32_0 = arith.constant 0 : i32
    %c0_i32_1 = arith.constant 0 : i32
    return %c0_i32, %c0_i32_0 : i32, i32
  }
  func.func @transform_2(%arg0: i32) -> (i32, i32) {
    %c0_i32 = arith.constant 0 : i32
    %c0_i32_0 = arith.constant 0 : i32
    %c0_i32_1 = arith.constant 0 : i32
    return %c0_i32, %c0_i32_0 : i32, i32
  }
  func.func @transform_3(%arg0: i32) -> (i32, i32) {
    %c0_i32 = arith.constant 0 : i32
    %c0_i32_0 = arith.constant 0 : i32
    return %arg0, %c0_i32 : i32, i32
  }
}

module attributes {stable_mosaic.version = 11 : i64} {
  func.func @_matmul_kernel(%arg0: i32, %arg1: i32, %arg2: i32, %arg3: memref<128x256xbf16, #tpu.memory_space<vmem>>, %arg4: memref<256x128xbf16, #tpu.memory_space<vmem>>, %arg5: memref<1x128xf32, #tpu.memory_space<vmem>>, %arg6: memref<128x128xbf16, #tpu.memory_space<vmem>>, %arg7: memref<128x128xf32, #tpu.memory_space<vmem>>) attributes {dimension_semantics = [#tpu.dimension_semantics<parallel>, #tpu.dimension_semantics<parallel>, #tpu.dimension_semantics<arbitrary>], iteration_bounds = array<i64: 1, 1, 1>, scalar_prefetch = 0 : i64, scratch_operands = 1 : i64, tpu.core_type = #tpu.core_type<tc>, window_params = [{transform_indices = @transform_0, window_bounds = array<i64: 128, 256>}, {transform_indices = @transform_1, window_bounds = array<i64: 256, 128>}, {transform_indices = @transform_2, window_bounds = array<i64: 1, 128>}, {transform_indices = @transform_3, window_bounds = array<i64: 128, 128>}]} {
    %c0_i32 = arith.constant 0 : i32
    %0 = arith.cmpi eq, %arg2, %c0_i32 : i32
    %1 = arith.extui %0 : i1 to i32
    %c0_i32_0 = arith.constant 0 : i32
    %2 = arith.cmpi ne, %1, %c0_i32_0 : i32
    scf.if %2 {
      %cst_11 = arith.constant 0.000000e+00 : f32
      %14 = vector.broadcast %cst_11 : f32 to vector<128x128xf32>
      %c0_12 = arith.constant 0 : index
      %c0_13 = arith.constant 0 : index
      %15 = vector.load %arg7[%c0_12, %c0_13] : memref<128x128xf32, #tpu.memory_space<vmem>>, vector<128x128xf32>
      tpu.vector_store %arg7[%c0_12, %c0_13], %14 {strides = array<i32>} : memref<128x128xf32, #tpu.memory_space<vmem>>, vector<128x128xf32>,
    } else {
    }
    %c0 = arith.constant 0 : index
    %c0_1 = arith.constant 0 : index
    %3 = vector.load %arg3[%c0, %c0_1] : memref<128x256xbf16, #tpu.memory_space<vmem>>, vector<128x256xbf16>
    %cst = arith.constant 0.000000e+00 : bf16
    %4 = vector.broadcast %cst : bf16 to vector<128x256xbf16>
    %5 = arith.maximumf %3, %4 : vector<128x256xbf16>
    %c0_2 = arith.constant 0 : index
    %c0_3 = arith.constant 0 : index
    %6 = vector.load %arg7[%c0_2, %c0_3] : memref<128x128xf32, #tpu.memory_space<vmem>>, vector<128x128xf32>
    %c0_4 = arith.constant 0 : index
    %c0_5 = arith.constant 0 : index
    %7 = vector.load %arg4[%c0_4, %c0_5] : memref<256x128xbf16, #tpu.memory_space<vmem>>, vector<256x128xbf16>
    %cst_6 = arith.constant dense<0.000000e+00> : vector<128x128xf32>
    %8 = tpu.matmul %5, %7, %cst_6 {dimension_numbers = #tpu.dot_dimension_numbers<[1], [0], [0], [1], [0, 0, 1, 1], [], []>} : vector<128x256xbf16>, vector<256x128xbf16>, vector<128x128xf32> -> vector<128x128xf32>
    %9 = arith.addf %6, %8 : vector<128x128xf32>
    %c0_7 = arith.constant 0 : index
    %c0_8 = arith.constant 0 : index
    %10 = vector.load %arg7[%c0_7, %c0_8] : memref<128x128xf32, #tpu.memory_space<vmem>>, vector<128x128xf32>
    tpu.vector_store %arg7[%c0_7, %c0_8], %9 {strides = array<i32>} : memref<128x128xf32, #tpu.memory_space<vmem>>, vector<128x128xf32>,
    %c0_i32_9 = arith.constant 0 : i32
    %11 = arith.cmpi eq, %arg2, %c0_i32_9 : i32
    %12 = arith.extui %11 : i1 to i32
    %c0_i32_10 = arith.constant 0 : i32
    %13 = arith.cmpi ne, %12, %c0_i32_10 : i32
    scf.if %13 {
      %c0_11 = arith.constant 0 : index
      %c0_12 = arith.constant 0 : index
      %14 = vector.load %arg7[%c0_11, %c0_12] : memref<128x128xf32, #tpu.memory_space<vmem>>, vector<128x128xf32>
      %c0_13 = arith.constant 0 : index
      %c0_14 = arith.constant 0 : index
      %15 = vector.load %arg5[%c0_13, %c0_14] : memref<1x128xf32, #tpu.memory_space<vmem>>, vector<1x128xf32>
      %16 = vector.broadcast %15 : vector<1x128xf32> to vector<128x128xf32>
      %17 = arith.addf %14, %16 : vector<128x128xf32>
      %18 = math.tanh %17 : vector<128x128xf32>
      %19 = arith.truncf %18 : vector<128x128xf32> to vector<128x128xbf16>
      %c0_15 = arith.constant 0 : index
      %c0_16 = arith.constant 0 : index
      %20 = vector.load %arg6[%c0_15, %c0_16] : memref<128x128xbf16, #tpu.memory_space<vmem>>, vector<128x128xbf16>
      tpu.vector_store %arg6[%c0_15, %c0_16], %19 {strides = array<i32>} : memref<128x128xbf16, #tpu.memory_space<vmem>>, vector<128x128xbf16>,
    } else {
    }
    return
  }
  func.func @transform_0(%arg0: i32, %arg1: i32, %arg2: i32) -> (i32, i32) {
    %c0_i32 = arith.constant 0 : i32
    return %arg0, %arg2 : i32, i32
  }
  func.func @transform_1(%arg0: i32, %arg1: i32, %arg2: i32) -> (i32, i32) {
    %c0_i32 = arith.constant 0 : i32
    return %arg2, %arg1 : i32, i32
  }
  func.func @transform_2(%arg0: i32, %arg1: i32, %arg2: i32) -> (i32, i32) {
    %c0_i32 = arith.constant 0 : i32
    %c0_i32_0 = arith.constant 0 : i32
    return %c0_i32, %arg1 : i32, i32
  }
  func.func @transform_3(%arg0: i32, %arg1: i32, %arg2: i32) -> (i32, i32) {
    %c0_i32 = arith.constant 0 : i32
    return %arg0, %arg1 : i32, i32
  }
}

</mosaic_0001>

<bundles_post_ra>
// kernel: _lambda_.12
= control target key start
LH: loop header
LB: loop body
LE: loop exit
PB: predicated region body
PF: predicated region fallthrough
CT: control target
= control target key end

     0   :  { %s581_s1 = inlined_call_operand.vmem [shape: bf16[128,128], index: 1, kind: input, shape index: {}]   ;;  %s582_s2 = inlined_call_operand.vmem [shape: f32[1,128], index: 2, kind: input, shape index: {}]   ;;  %s583_s0 = inlined_call_operand.vmem [shape: bf16[128,128], index: 0, kind: input, shape index: {}]   ;;  %s584_s3 = inlined_call_operand.vmem [shape: bf16[128,128], index: 3, kind: output, shape index: {}]  }
   0x1   :  { %v413_v0 = vld [vmem:[%s581_s1 + $0x38] sm:$0xff]  ;;  %v412_v1 = vld [vmem:[%s581_s1 + $0x30] sm:$0xff]  ;;  %v411_v2 = vld [vmem:[%s581_s1 + $0x28] sm:$0xff] }
   0x2   :  { %178 = vmatpush.bf16.msra.mxu0 %v413_v0  ;;  %461 = vmatpush.bf16.msra.mxu1 %v413_v0  ;;  %v410_v3 = vld [vmem:[%s581_s1 + $0x20] sm:$0xff]  ;;  %v409_v4 = vld [vmem:[%s581_s1 + $0x18] sm:$0xff]  ;;  %v408_v5 = vld [vmem:[%s581_s1 + $0x10] sm:$0xff] }
   0x3   :  { %462 = vmatpush.bf16.msra.mxu2 %v413_v0  ;;  %463 = vmatpush.bf16.msra.mxu3 %v413_v0  ;;  %v407_v6 = vld [vmem:[%s581_s1 + $0x8] sm:$0xff]  ;;  %v406_v7 = vld [vmem:[%s581_s1] sm:$0xff]  ;;  %v400_v9 = vld [vmem:[%s583_s0 + $0x10] sm:$0xff] }
   0x4   :  { %v398_v8 = vld [vmem:[%s583_s0] sm:$0xff]  ;;  %v404_v11 = vld [vmem:[%s583_s0 + $0x30] sm:$0xff]  ;;  %v399_v12 = vld [vmem:[%s583_s0 + $0x8] sm:$0xff] }
   0x5   :  { %v402_v10 = vld [vmem:[%s583_s0 + $0x20] sm:$0xff]  ;;  %v401_v13 = vld [vmem:[%s583_s0 + $0x18] sm:$0xff]  ;;  %v403_v14 = vld [vmem:[%s583_s0 + $0x28] sm:$0xff] }
   0x6   :  { %179 = vmatpush.bf16.msra.mxu0 %v412_v1  ;;  %464 = vmatpush.bf16.msra.mxu1 %v412_v1  ;;  %v405_v15 = vld [vmem:[%s583_s0 + $0x38] sm:$0xff]  ;;  %v485_v18 = vld [vmem:[%s582_s2] ss:$0 sm:$0xff] }
   0x7   :  { %465 = vmatpush.bf16.msra.mxu2 %v412_v1  ;;  %466 = vmatpush.bf16.msra.mxu3 %v412_v1 }
   0xa   :  { %180 = vmatpush.bf16.msra.mxu0 %v411_v2  ;;  %467 = vmatpush.bf16.msra.mxu1 %v411_v2 }
   0xb   :  { %468 = vmatpush.bf16.msra.mxu2 %v411_v2  ;;  %469 = vmatpush.bf16.msra.mxu3 %v411_v2 }
   0xe   :  { %181 = vmatpush.bf16.msra.mxu0 %v410_v3  ;;  %470 = vmatpush.bf16.msra.mxu1 %v410_v3 }
   0xf   :  { %471 = vmatpush.bf16.msra.mxu2 %v410_v3  ;;  %472 = vmatpush.bf16.msra.mxu3 %v410_v3 }
  0x12   :  { %182 = vmatpush.bf16.msra.mxu0 %v409_v4  ;;  %473 = vmatpush.bf16.msra.mxu1 %v409_v4 }
  0x13   :  { %474 = vmatpush.bf16.msra.mxu2 %v409_v4  ;;  %475 = vmatpush.bf16.msra.mxu3 %v409_v4 }
  0x16   :  { %183 = vmatpush.bf16.msra.mxu0 %v408_v5  ;;  %476 = vmatpush.bf16.msra.mxu1 %v408_v5 }
  0x17   :  { %477 = vmatpush.bf16.msra.mxu2 %v408_v5  ;;  %478 = vmatpush.bf16.msra.mxu3 %v408_v5 }
  0x1a   :  { %184 = vmatpush.bf16.msra.mxu0 %v407_v6  ;;  %479 = vmatpush.bf16.msra.mxu1 %v407_v6 }
  0x1b   :  { %480 = vmatpush.bf16.msra.mxu2 %v407_v6  ;;  %481 = vmatpush.bf16.msra.mxu3 %v407_v6 }
  0x1e   :  { %185 = vmatpush.bf16.msra.mxu0 %v406_v7  ;;  %482 = vmatpush.bf16.msra.mxu1 %v406_v7 }
  0x1f   :  { %483 = vmatpush.bf16.msra.mxu2 %v406_v7  ;;  %484 = vmatpush.bf16.msra.mxu3 %v406_v7 }
  0x21   :  { %186 = vmatmul.bf16.vlgmr.msra.gmra.mxu0 %v398_v8  ;;  %196 = vmatmul.bf16.vlgmr.msra.gmra.mxu1 %v400_v9 }
  0x22   :  { %206 = vmatmul.bf16.vlgmr.msra.gmra.mxu2 %v402_v10  ;;  %216 = vmatmul.bf16.vlgmr.msra.gmra.mxu3 %v404_v11 }
  0x31   :  { %191 = vmatmul.bf16.gmra.mxu0 %v399_v12  ;;  %201 = vmatmul.bf16.gmra.mxu1 %v401_v13 }
  0x32   :  { %211 = vmatmul.bf16.gmra.mxu2 %v403_v14  ;;  %221 = vmatmul.bf16.gmra.mxu3 %v405_v15 }
  0x9e   :  { %v187_v16 = vpop.f32.mrf.mxu0  ;;  %v197_v17 = vpop.f32.mrf.mxu1 }
  0x9f   :  { %v282_v23 = vadd.f32 %v485_v18, %v187_v16  ;;  %v286_v24 = vadd.f32 %v485_v18, %v197_v17 }
  0xa5   :  { %v207_v19 = vpop.f32.mrf.mxu2  ;;  %v217_v20 = vpop.f32.mrf.mxu3 }
  0xa6   :  { %v189_v21 = vpop.f32.mrf.mxu0  ;;  %v199_v22 = vpop.f32.mrf.mxu1  ;;  %v290_v31 = vadd.f32 %v485_v18, %v207_v19  ;;  %v294_v32 = vadd.f32 %v485_v18, %v217_v20 }
  0xa7   :  { %v283_v25 = vadd.f32 %v485_v18, %v189_v21  ;;  %v287_v26 = vadd.f32 %v485_v18, %v199_v22 }
  0xa9   :  { %v417_v27 = vpack.c.bf16 %v283_v25, %v282_v23  ;;  %v427_v28 = vpack.c.bf16 %v287_v26, %v286_v24 }
  0xab   :  { %418 = vst [vmem:[%s584_s3] sm:$0xff] %v417_v27  }
  0xac   :  { %455 = vst [vmem:[%s584_s3 + $0x10] sm:$0xff] %v427_v28  }
  0xad   :  { %v209_v29 = vpop.f32.mrf.mxu2  ;;  %v219_v30 = vpop.f32.mrf.mxu3 }
  0xae   :  { %v291_v33 = vadd.f32 %v485_v18, %v209_v29  ;;  %v295_v34 = vadd.f32 %v485_v18, %v219_v30  ;;  %v192_v35 = vpop.f32.mrf.mxu0  ;;  %v202_v36 = vpop.f32.mrf.mxu1 }
  0xaf   :  { %v284_v43 = vadd.f32 %v485_v18, %v192_v35  ;;  %v288_v44 = vadd.f32 %v485_v18, %v202_v36 }
  0xb0   :  { %v437_v37 = vpack.c.bf16 %v291_v33, %v290_v31  ;;  %v447_v38 = vpack.c.bf16 %v295_v34, %v294_v32 }
  0xb2   :  { %457 = vst [vmem:[%s584_s3 + $0x20] sm:$0xff] %v437_v37  }
  0xb3   :  { %459 = vst [vmem:[%s584_s3 + $0x30] sm:$0xff] %v447_v38  }
  0xb5   :  { %v212_v39 = vpop.f32.mrf.mxu2  ;;  %v222_v40 = vpop.f32.mrf.mxu3 }
  0xb6   :  { %v194_v41 = vpop.f32.mrf.mxu0  ;;  %v204_v42 = vpop.f32.mrf.mxu1  ;;  %v292_v51 = vadd.f32 %v485_v18, %v212_v39  ;;  %v296_v52 = vadd.f32 %v485_v18, %v222_v40 }
  0xb7   :  { %v285_v45 = vadd.f32 %v485_v18, %v194_v41  ;;  %v289_v46 = vadd.f32 %v485_v18, %v204_v42 }
  0xb9   :  { %v422_v47 = vpack.c.bf16 %v285_v45, %v284_v43  ;;  %v432_v48 = vpack.c.bf16 %v289_v46, %v288_v44 }
  0xbb   :  { %454 = vst [vmem:[%s584_s3 + $0x8] sm:$0xff] %v422_v47  }
  0xbc   :  { %456 = vst [vmem:[%s584_s3 + $0x18] sm:$0xff] %v432_v48  }
  0xbd   :  { %v214_v49 = vpop.f32.mrf.mxu2  ;;  %v224_v50 = vpop.f32.mrf.mxu3 }
  0xbe   :  { %v293_v53 = vadd.f32 %v485_v18, %v214_v49  ;;  %v297_v54 = vadd.f32 %v485_v18, %v224_v50 }
  0xc0   :  { %v442_v55 = vpack.c.bf16 %v293_v53, %v292_v51  ;;  %v452_v56 = vpack.c.bf16 %v297_v54, %v296_v52 }
  0xc2   :  { %458 = vst [vmem:[%s584_s3 + $0x28] sm:$0xff] %v442_v55  }
  0xc3   :  { %460 = vst [vmem:[%s584_s3 + $0x38] sm:$0xff] %v452_v56  }

// kernel: _lambda_.14
= control target key start
LH: loop header
LB: loop body
LE: loop exit
PB: predicated region body
PF: predicated region fallthrough
CT: control target
= control target key end

     0   :  { %v70_v0 = vmov 0.0   ;;  %s110_s1 = inlined_call_operand.vmem [shape: f32[1,128], index: 1, kind: output, shape index: {0}]   ;;  %s111_s2 = inlined_call_operand.vmem [shape: f32[1,128], index: 2, kind: output, shape index: {1}]   ;;  %s112_s0 = inlined_call_operand.vmem [shape: bf16[32,128], index: 0, kind: input, shape index: {}]  }
   0x1   :  { %14 = vst [vmem:[%s110_s1] sm:$0x1] %v70_v0  ;;  %v61_v1 = vld [vmem:[%s112_s0] sm:$0xff]   ;;  %v68_v2 = vld [vmem:[%s112_s0 + $0x8] sm:$0xff]  }
   0x2   :  { %15 = vst [vmem:[%s111_s2] sm:$0x1] %v70_v0  ;;  %v62_v3 = vunpack.c.l.bf16 %v61_v1  ;;  %v63_v4 = vunpack.c.h.bf16 %v61_v1  ;;  %v66_v5 = vunpack.c.l.bf16 %v68_v2  ;;  %v67_v6 = vunpack.c.h.bf16 %v68_v2 }
   0x4   :  { %v25_v7 = vadd.f32 %v63_v4, %v62_v3  ;;  %v37_v8 = vmul.f32 %v62_v3, %v62_v3  ;;  %v38_v9 = vmul.f32 %v63_v4, %v63_v4  ;;  %v39_v10 = vmul.f32 %v66_v5, %v66_v5 }
   0x5   :  { %v40_v12 = vmul.f32 %v67_v6, %v67_v6 }
   0x6   :  { %v26_v11 = vadd.f32 %v66_v5, %v25_v7  ;;  %v41_v13 = vadd.f32 %v38_v9, %v37_v8 }
   0x8   :  { %v27_v14 = vadd.f32 %v67_v6, %v26_v11  ;;  %v42_v15 = vadd.f32 %v41_v13, %v39_v10  ;;  %v24_v26 = vld [vmem:[%s110_s1] sm:$0x1] }
   0x9   :  { %v36_v29 = vld [vmem:[%s111_s2] sm:$0x1] }
   0xa   :  { %v28_v16 = vrot.slane %v27_v14, 4  ;;  %v43_v17 = vadd.f32 %v42_v15, %v40_v12 }
   0xc   :  { %v29_v18 = vadd.f32 %v28_v16, %v27_v14  ;;  %v44_v19 = vrot.slane %v43_v17, 4 }
   0xe   :  { %v30_v20 = vrot.slane %v29_v18, 2  ;;  %v45_v21 = vadd.f32 %v44_v19, %v43_v17 }
  0x10   :  { %v31_v22 = vadd.f32 %v30_v20, %v29_v18  ;;  %v46_v23 = vrot.slane %v45_v21, 2 }
  0x12   :  { %v32_v24 = vrot.slane %v31_v22, 1  ;;  %v47_v25 = vadd.f32 %v46_v23, %v45_v21 }
  0x14   :  { %v33_v27 = vadd.f32 %v32_v24, %v31_v22  ;;  %v48_v28 = vrot.slane %v47_v25, 1 }
  0x16   :  { %v34_v30 = vadd.f32 %v33_v27, %v24_v26  ;;  %v49_v31 = vadd.f32 %v48_v28, %v47_v25 }
  0x18   :  { %35 = vst [vmem:[%s110_s1] sm:$0x1] %v34_v30  ;;  %v50_v32 = vadd.f32 %v49_v31, %v36_v29 }
  0x1a   :  { %51 = vst [vmem:[%s111_s2] sm:$0x1] %v50_v32 }

// kernel: _lambda_.13
= control target key start
LH: loop header
LB: loop body
LE: loop exit
PB: predicated region body
PF: predicated region fallthrough
CT: control target
= control target key end

     0   :  { %s337_s1 = inlined_call_operand.vmem [shape: bf16[128,128], index: 1, kind: input, shape index: {}]   ;;  %s338_s0 = inlined_call_operand.vmem [shape: bf16[32,128], index: 0, kind: input, shape index: {}]   ;;  %s339_s2 = inlined_call_operand.vmem [shape: f32[1,128], index: 2, kind: input, shape index: {}]   ;;  %s340_s3 = inlined_call_operand.vmem [shape: bf16[32,128], index: 3, kind: output, shape index: {}]  }
   0x1   :  { %v223_v0 = vld [vmem:[%s337_s1 + $0x38] sm:$0xff]  ;;  %v222_v1 = vld [vmem:[%s337_s1 + $0x30] sm:$0xff]  ;;  %v221_v2 = vld [vmem:[%s337_s1 + $0x28] sm:$0xff] }
   0x2   :  { %130 = vmatpush.bf16.msra.mxu0 %v223_v0  ;;  %235 = vmatpush.bf16.msra.mxu1 %v223_v0  ;;  %v22_v3 = vld [vmem:[%s338_s0] sm:$0xf]  ;;  %v23_v4 = vld [vmem:[%s338_s0 + $0x4] sm:$0xf]  ;;  %v24_v5 = vld [vmem:[%s338_s0 + $0x8] sm:$0xf] }
   0x3   :  { %v25_v6 = vld [vmem:[%s338_s0 + $0xc] sm:$0xf]  ;;  %v26_v7 = vunpack.c.l.bf16 %v22_v3  ;;  %v220_v8 = vld [vmem:[%s337_s1 + $0x20] sm:$0xff]  ;;  %v27_v9 = vunpack.c.l.bf16 %v23_v4  ;;  %v28_v10 = vunpack.c.l.bf16 %v24_v5  ;;  %v219_v14 = vld [vmem:[%s337_s1 + $0x18] sm:$0xff] }
   0x4   :  { %v29_v11 = vunpack.c.l.bf16 %v25_v6  ;;  %v218_v22 = vld [vmem:[%s337_s1 + $0x10] sm:$0xff]  ;;  %v217_v27 = vld [vmem:[%s337_s1 + $0x8] sm:$0xff]  ;;  %v216_v35 = vld [vmem:[%s337_s1] sm:$0xff] }
   0x5   :  { %vm288_vm0 = vcmp.gt.f32.partialorder %v26_v7, 0.0  ;;  %v34_v13 = vmul.f32 0.20019531, %v26_v7  ;;  %vm295_vm1 = vcmp.gt.f32.partialorder %v27_v9, 0.0  ;;  %v35_v16 = vmul.f32 0.20019531, %v27_v9  ;;  %v243_v40 = vld [vmem:[%s339_s2] ss:$0 sm:$0xff] }
   0x6   :  { %131 = vmatpush.bf16.msra.mxu0 %v222_v1  ;;  %236 = vmatpush.bf16.msra.mxu1 %v222_v1  ;;  %v36_v17 = vmul.f32 0.20019531, %v28_v10  ;;  %v37_v18 = vmul.f32 0.20019531, %v29_v11  ;;  %vm299_vm2 = vcmp.gt.f32.partialorder %v28_v10, 0.0  ;;  %vm42_vm3 = vmpackc.low %vm288_vm0, %vm288_vm0  ;;  %vm306_vm4 = vcmp.gt.f32.partialorder %v29_v11, 0.0 }
   0x7   :  { %v38_v21 = vpack.c.bf16 %v34_v13, %v34_v13  ;;  %vm43_vm5 = vmpackc.low %vm295_vm1, %vm295_vm1  ;;  %v39_v23 = vpack.c.bf16 %v35_v16, %v35_v16 }
   0x8   :  { %v40_v24 = vpack.c.bf16 %v36_v17, %v36_v17  ;;  %v41_v25 = vpack.c.bf16 %v37_v18, %v37_v18  ;;  %vm44_vm6 = vmpackc.low %vm299_vm2, %vm299_vm2 }
   0x9   :  { %vm45_vm7 = vmpackc.low %vm306_vm4, %vm306_vm4  ;;  %v46_v26 = vsel %vm42_vm3, %v22_v3, %v38_v21  ;;  %v47_v28 = vsel %vm43_vm5, %v23_v4, %v39_v23 }
   0xa   :  { %132 = vmatpush.bf16.msra.mxu0 %v221_v2  ;;  %237 = vmatpush.bf16.msra.mxu1 %v221_v2  ;;  %v48_v29 = vsel %vm44_vm6, %v24_v5, %v40_v24  ;;  %v49_v30 = vsel %vm45_vm7, %v25_v6, %v41_v25  ;;  %v74_v31 = vunpack.c.l.b16 %v46_v26  ;;  %v75_v32 = vunpack.c.l.b16 %v47_v28 }
   0xb   :  { %v76_v33 = vunpack.c.l.b16 %v48_v29  ;;  %v77_v34 = vunpack.c.l.b16 %v49_v30 }
   0xc   :  { %v78_v36 = vpack.c.b16 %v75_v32, %v74_v31 }
   0xd   :  { %v79_v37 = vpack.c.b16 %v77_v34, %v76_v33 }
   0xe   :  { %133 = vmatpush.bf16.msra.mxu0 %v220_v8  ;;  %238 = vmatpush.bf16.msra.mxu1 %v220_v8 }
  0x12   :  { %134 = vmatpush.bf16.msra.mxu0 %v219_v14  ;;  %239 = vmatpush.bf16.msra.mxu1 %v219_v14 }
  0x16   :  { %135 = vmatpush.bf16.msra.mxu0 %v218_v22  ;;  %240 = vmatpush.bf16.msra.mxu1 %v218_v22 }
  0x1a   :  { %136 = vmatpush.bf16.msra.mxu0 %v217_v27  ;;  %241 = vmatpush.bf16.msra.mxu1 %v217_v27 }
  0x1e   :  { %137 = vmatpush.bf16.msra.mxu0 %v216_v35  ;;  %242 = vmatpush.bf16.msra.mxu1 %v216_v35 }
  0x21   :  { %138 = vmatmul.bf16.vlgmr.msra.gmra.mxu0 %v78_v36  ;;  %143 = vmatmul.bf16.vlgmr.msra.gmra.mxu1 %v79_v37 }
  0x9e   :  { %v139_v38 = vpop.f32.mrf.mxu0  ;;  %v144_v39 = vpop.f32.mrf.mxu1 }
  0x9f   :  { %v168_v43 = vadd.f32 %v243_v40, %v139_v38  ;;  %v170_v44 = vadd.f32 %v243_v40, %v144_v39 }
  0xa6   :  { %v141_v41 = vpop.f32.mrf.mxu0  ;;  %v146_v42 = vpop.f32.mrf.mxu1 }
  0xa7   :  { %v169_v45 = vadd.f32 %v243_v40, %v141_v41  ;;  %v171_v46 = vadd.f32 %v243_v40, %v146_v42 }
  0xa9   :  { %v227_v47 = vpack.c.bf16 %v169_v45, %v168_v43  ;;  %v232_v48 = vpack.c.bf16 %v171_v46, %v170_v44 }
  0xab   :  { %228 = vst [vmem:[%s340_s3] sm:$0xff] %v227_v47  }
  0xac   :  { %234 = vst [vmem:[%s340_s3 + $0x8] sm:$0xff] %v232_v48  }

// kernel: _lambda_.15
= control target key start
LH: loop header
LB: loop body
LE: loop exit
PB: predicated region body
PF: predicated region fallthrough
CT: control target
= control target key end

     0   :  { %s110_s0 = inlined_call_operand.vmem [shape: bf16[32,128], index: 0, kind: input, shape index: {}]   ;;  %s111_s1 = inlined_call_operand.vmem [shape: f32[1,128], index: 1, kind: input, shape index: {}]   ;;  %s112_s2 = inlined_call_operand.vmem [shape: f32[1,128], index: 2, kind: input, shape index: {}]   ;;  %s113_s3 = inlined_call_operand.vmem [shape: bf16[32,128], index: 3, kind: output, shape index: {}]  }
   0x1   :  { %v51_v0 = vld [vmem:[%s110_s0] sm:$0xff]   ;;  %v68_v5 = vld [vmem:[%s110_s0 + $0x8] sm:$0xff]  }
   0x2   :  { %v70_v1 = vld [vmem:[%s111_s1] ss:$0 sm:$0xff]  ;;  %v52_v2 = vunpack.c.l.bf16 %v51_v0  ;;  %v53_v3 = vunpack.c.h.bf16 %v51_v0  ;;  %v56_v6 = vunpack.c.l.bf16 %v68_v5  ;;  %v57_v7 = vunpack.c.h.bf16 %v68_v5 }
   0x3   :  { %v71_v4 = vld [vmem:[%s112_s2] ss:$0 sm:$0xff] }
   0x4   :  { %v26_v8 = vmul.f32 %v70_v1, %v52_v2  ;;  %v27_v9 = vmul.f32 %v70_v1, %v53_v3  ;;  %v28_v10 = vmul.f32 %v70_v1, %v56_v6  ;;  %v29_v11 = vmul.f32 %v70_v1, %v57_v7 }
   0x6   :  { %v34_v12 = vadd.f32 %v71_v4, %v26_v8  ;;  %v35_v13 = vadd.f32 %v71_v4, %v27_v9  ;;  %v36_v14 = vadd.f32 %v71_v4, %v28_v10  ;;  %v37_v15 = vadd.f32 %v71_v4, %v29_v11 }
   0x8   :  { %v61_v16 = vpack.c.bf16 %v35_v13, %v34_v12  ;;  %v66_v17 = vpack.c.bf16 %v37_v15, %v36_v14 }
   0xa   :  { %62 = vst [vmem:[%s113_s3] sm:$0xff] %v61_v16  }
   0xb   :  { %69 = vst [vmem:[%s113_s3 + $0x8] sm:$0xff] %v66_v17  }

// kernel: _lambda_.16
= control target key start
LH: loop header
LB: loop body
LE: loop exit
PB: predicated region body
PF: predicated region fallthrough
CT: control target
= control target key end

     0   :  { %s366_s1 = inlined_call_operand.vmem [shape: bf16[256,128], index: 1, kind: input, shape index: {}]   ;;  %s367_s0 = inlined_call_operand.vmem [shape: bf16[8,256], index: 0, kind: input, shape index: {}]   ;;  %s368_s2 = inlined_call_operand.vmem [shape: f32[1,128], index: 2, kind: input, shape index: {}]   ;;  %s369_s3 = inlined_call_operand.vmem [shape: bf16[8,128], index: 3, kind: output, shape index: {}]  }
   0x1   :  { %v279_v0 = vld [vmem:[%s366_s1 + $0x38] sm:$0xff]  ;;  %v278_v2 = vld [vmem:[%s366_s1 + $0x30] sm:$0xff]  ;;  %v277_v4 = vld [vmem:[%s366_s1 + $0x28] sm:$0xff] }
   0x2   :  { %v287_v1 = vld [vmem:[%s366_s1 + $0x78] sm:$0xff]  ;;  %165 = vmatpush.bf16.msra.mxu0 %v279_v0  ;;  %v286_v3 = vld [vmem:[%s366_s1 + $0x70] sm:$0xff]  ;;  %v285_v5 = vld [vmem:[%s366_s1 + $0x68] sm:$0xff] }
   0x3   :  { %178 = vmatpush.bf16.msra.mxu1 %v287_v1  ;;  %v19_v6 = vld [vmem:[%s367_s0] sm:$0xff]  ;;  %v275_v11 = vld [vmem:[%s366_s1 + $0x18] sm:$0xff]  ;;  %v274_v15 = vld [vmem:[%s366_s1 + $0x10] sm:$0xff] }
   0x4   :  { %v276_v7 = vld [vmem:[%s366_s1 + $0x20] sm:$0xff]  ;;  %v20_v9 = vunpack.c.l.bf16 %v19_v6  ;;  %v21_v10 = vunpack.c.h.bf16 %v19_v6  ;;  %v283_v12 = vld [vmem:[%s366_s1 + $0x58] sm:$0xff]  ;;  %v282_v16 = vld [vmem:[%s366_s1 + $0x50] sm:$0xff] }
   0x5   :  { %v284_v8 = vld [vmem:[%s366_s1 + $0x60] sm:$0xff]  ;;  %v273_v18 = vld [vmem:[%s366_s1 + $0x8] sm:$0xff] }
   0x6   :  { %166 = vmatpush.bf16.msra.mxu0 %v278_v2  ;;  %v24_v13 = vmul.f32 0.20019531, %v20_v9  ;;  %v25_v14 = vmul.f32 0.20019531, %v21_v10  ;;  %vm22_vm0 = vcmp.gt.f32.partialorder %v20_v9, 0.0  ;;  %vm23_vm1 = vcmp.gt.f32.partialorder %v21_v10, 0.0  ;;  %v281_v19 = vld [vmem:[%s366_s1 + $0x48] sm:$0xff]  ;;  %v272_v23 = vld [vmem:[%s366_s1] sm:$0xff] }
   0x7   :  { %179 = vmatpush.bf16.msra.mxu1 %v286_v3  ;;  %vm27_vm2 = vmpackc.low %vm23_vm1, %vm22_vm0  ;;  %v280_v24 = vld [vmem:[%s366_s1 + $0x40] sm:$0xff] }
   0x8   :  { %v26_v17 = vpack.c.bf16 %v25_v14, %v24_v13  ;;  %v288_v27 = vld [vmem:[%s368_s2] ss:$0 sm:$0xff] }
   0xa   :  { %167 = vmatpush.bf16.msra.mxu0 %v277_v4  ;;  %v28_v20 = vsel %vm27_vm2, %v19_v6, %v26_v17 }
   0xb   :  { %180 = vmatpush.bf16.msra.mxu1 %v285_v5  ;;  %v63_v21 = vunpack.c.l.b16 %v28_v20  ;;  %v64_v22 = vunpack.c.h.b16 %v28_v20 }
   0xd   :  { %v65_v25 = vpack.c.b16 %v63_v21, %v63_v21  ;;  %v66_v26 = vpack.c.b16 %v64_v22, %v64_v22 }
   0xe   :  { %168 = vmatpush.bf16.msra.mxu0 %v276_v7 }
   0xf   :  { %181 = vmatpush.bf16.msra.mxu1 %v284_v8 }
  0x12   :  { %169 = vmatpush.bf16.msra.mxu0 %v275_v11 }
  0x13   :  { %182 = vmatpush.bf16.msra.mxu1 %v283_v12 }
  0x16   :  { %170 = vmatpush.bf16.msra.mxu0 %v274_v15 }
  0x17   :  { %183 = vmatpush.bf16.msra.mxu1 %v282_v16 }
  0x1a   :  { %171 = vmatpush.bf16.msra.mxu0 %v273_v18 }
  0x1b   :  { %184 = vmatpush.bf16.msra.mxu1 %v281_v19 }
  0x1e   :  { %172 = vmatpush.bf16.msra.mxu0 %v272_v23 }
  0x1f   :  { %185 = vmatpush.bf16.msra.mxu1 %v280_v24 }
  0x21   :  { %173 = vmatmul.bf16.vlgmr.msra.gmra.mxu0 %v65_v25 }
  0x22   :  { %186 = vmatmul.bf16.vlgmr.msra.gmra.mxu1 %v66_v26 }
  0x9e   :  { %v174_v28 = vpop.f32.mrf.mxu0 }
  0x9f   :  { %v187_v29 = vpop.f32.mrf.mxu1 }
  0xa0   :  { %v188_v30 = vadd.f32 %v187_v29, %v174_v28 }
  0xa2   :  { %v201_v31 = vadd.f32 %v288_v27, %v188_v30 }
  0xa4   :  { %v202_v32 = vpack.c.bf16 %v201_v31, %v201_v31 }
  0xa6   :  { %203 = vst [vmem:[%s369_s3] sm:$0xf] %v202_v32  ;;  %v176_v33 = vpop.f32.mrf.mxu0 }
  0xa7   :  { %v189_v34 = vpop.f32.mrf.mxu1 }

// kernel: _lambda_.17
= control target key start
LH: loop header
LB: loop body
LE: loop exit
PB: predicated region body
PF: predicated region fallthrough
CT: control target
= control target key end

     0   :  { %s584_s12 = smov 0   ;;  %s586_s13 = smov 0   ;;  %s630_s0 = inlined_call_operand.vmem [shape: bf16[8,384], index: 0, kind: input, shape index: {}]   ;;  %s631_s1 = inlined_call_operand.vmem [shape: bf16[384,128], index: 1, kind: input, shape index: {}]   ;;  %s632_s2 = inlined_call_operand.vmem [shape: f32[1,128], index: 2, kind: input, shape index: {}]   ;;  %s633_s3 = inlined_call_operand.vmem [shape: bf16[8,128], index: 3, kind: output, shape index: {}]  }
   0x1   :  { %s588_s14 = smov 0  }
   0x2 LB: > { %s25_s15 = sadd.s32 1, %s557_s13  ;;  %p464_p0 = scmp.ge.s32.totalorder %s561_s14, 1  ;;  %s561_s14 = sphi %s588_s14, %s13_s14   ;;  %s557_s13 = sphi %s586_s13, %s635_s13   ;;  %s553_s12 = sphi %s584_s12, %s634_s12  }
   0x3   : > { %p26_p1 = scmp.ge.s32.totalorder %s25_s15, 3  ;;  %p187_p2 = scmp.lt.s32.totalorder %s561_s14, 4 }
   0x5   : > { %s637_s15 = smov (%p26_p1, %s25_s15), 0  ;;  %p188_p3 = pnand %p464_p0, %p187_p2 }
   0x6   : > { %p229_p4 = scmp.lt.s32.totalorder (!%p188_p3), %s553_s12, 2  ;;  %s466_s16 = sshll.u32 (!%p188_p3), %s553_s12, 4 }
   0x7   : > { %191 = sbr.rel (%p188_p3) target bundleno = 193 (0xc1), region = 32  ;;  %p236_p5 = scmp.lt.s32.totalorder (!%p188_p3), %s466_s16, 47 }
   0x8   : > { %p468_p6 = scmp.ne.s32.totalorder (!%p188_p3), %s553_s12, 0 }
   0xc   : > { %s230_s17 = scalar_select %p229_p4, %s553_s12, 2 }
   0xd   : > { %s639_s16 = smov (!%p236_p5, %s466_s16), 47  ;;  %257 = sbr.rel (%p468_p6) target bundleno = 20 (0x14), region = 36 }
   0xe   : > { %s465_s18 = sshll.u32 %s230_s17, 2  ;;  %s467_s22 = sshll.u32 %s639_s16, 2 }
   0xf   : > { %s234_s21 = scalar_lea.vmem %s630_s0, %s465_s18  ;;  %s242_s25 = scalar_lea.vmem %s631_s1, %s467_s22 }
  0x12   : > { %v563_v0 = vmov 0.0  }
  0x13   : > { %258 = vst [vmem:[#allocation2] sm:$0xff] %v563_v0 }
  0x14 PF: > { %v512_v1 = vld [vmem:[%s242_s25 + $0x38] sm:$0xff]  ;;  %v511_v2 = vld [vmem:[%s242_s25 + $0x30] sm:$0xff]  ;;  %v510_v3 = vld [vmem:[%s242_s25 + $0x28] sm:$0xff]  ;;  %p501_p7 = scmp.ne.s32.totalorder %s553_s12, 2 }
  0x15   : > { %328 = vmatpush.bf16.msra.mxu0 %v512_v1  ;;  %v509_v4 = vld [vmem:[%s242_s25 + $0x20] sm:$0xff]  ;;  %v508_v5 = vld [vmem:[%s242_s25 + $0x18] sm:$0xff]  ;;  %v507_v6 = vld [vmem:[%s242_s25 + $0x10] sm:$0xff] }
  0x16   : > { %v259_v7 = vld [vmem:[%s234_s21] sm:$0xf]  ;;  %v506_v9 = vld [vmem:[%s242_s25 + $0x8] sm:$0xff] }
  0x17   : > { %v260_v8 = vunpack.c.l.bf16 %v259_v7  ;;  %v505_v11 = vld [vmem:[%s242_s25] sm:$0xff] }
  0x19   : > { %329 = vmatpush.bf16.msra.mxu0 %v511_v2  ;;  %v261_v10 = vmax.f32 %v260_v8, 0.0 }
  0x1a   : > { %v263_v13 = vld [vmem:[#allocation2] sm:$0xff] }
  0x1b   : > { %v262_v12 = vpack.c.bf16 %v261_v10, %v261_v10 }
  0x1d   : > { %330 = vmatpush.bf16.msra.mxu0 %v510_v3 }
  0x21   : > { %331 = vmatpush.bf16.msra.mxu0 %v509_v4 }
  0x25   : > { %332 = vmatpush.bf16.msra.mxu0 %v508_v5 }
  0x29   : > { %333 = vmatpush.bf16.msra.mxu0 %v507_v6 }
  0x2d   : > { %334 = vmatpush.bf16.msra.mxu0 %v506_v9 }
  0x31   : > { %335 = vmatpush.bf16.msra.mxu0 %v505_v11 }
  0x34   : > { %336 = vmatmul.bf16.vlgmr.msra.gmra.mxu0 %v262_v12 }
  0xb1   : > { %v337_v14 = vpop.f32.mrf.mxu0 }
  0xb2   : > { %v341_v15 = vadd.f32 %v337_v14, %v263_v13 }
  0xb4   : > { %342 = vst [vmem:[#allocation2] sm:$0xff] %v341_v15 }
  0xb5   : > { %346 = sbr.rel (%p501_p7) target bundleno = 193 (0xc1), region = 40 }
  0xb9   : > { %v339_v16 = vpop.f32.mrf.mxu0 }
  0xba   : > { %v538_v18 = vld [vmem:[%s632_s2] ss:$0 sm:$0xff] }
  0xbb   : > { %v347_v17 = vld [vmem:[#allocation2] sm:$0xff] }
  0xbc   : > { %v352_v19 = vadd.f32 %v538_v18, %v347_v17 }
  0xbe   : > { %v353_v20 = vpack.c.bf16 %v352_v19, %v352_v19 }
  0xc0   : > { %354 = vst [vmem:[%s633_s3] sm:$0xf] %v353_v20 }
  0xc1 PF: > { %s13_s14 = sadd.s32 1, %s561_s14   ;;  %s634_s12 = smov %s557_s13 }
  0xc2   : > { %p10_p8 = scmp.ge.s32.totalorder %s13_s14, 5   ;;  %s635_s13 = smov %s637_s15 }
  0xc4   :  { %12 = sbr.rel (!%p10_p8) target bundleno = 2 (0x2), region = 76 }

// kernel: _lambda_.20
= control target key start
LH: loop header
LB: loop body
LE: loop exit
PB: predicated region body
PF: predicated region fallthrough
CT: control target
= control target key end

     0   :  { %s745_s12 = smov 0   ;;  %s747_s13 = smov 0   ;;  %s834_s0 = inlined_call_operand.vmem [shape: bf16[32,384], index: 0, kind: input, shape index: {}]   ;;  %s835_s1 = inlined_call_operand.vmem [shape: bf16[384,128], index: 1, kind: input, shape index: {}]   ;;  %s836_s2 = inlined_call_operand.vmem [shape: f32[1,128], index: 2, kind: input, shape index: {}]   ;;  %s837_s3 = inlined_call_operand.vmem [shape: bf16[32,128], index: 3, kind: output, shape index: {}]  }
   0x1   :  { %s749_s14 = smov 0   ;;  %s751_s15 = smov 0  }
   0x2   :  { %s753_s16 = smov 0  }
   0x3 LB: > { %s25_s17 = sadd.s32 1, %s718_s15  ;;  %p48_p1 = scmp.ne.s32.totalorder %s710_s13, %s706_s12  ;;  %s722_s16 = sphi %s753_s16, %s13_s16   ;;  %s718_s15 = sphi %s751_s15, %s841_s15   ;;  %s714_s14 = sphi %s749_s14, %s840_s14   ;;  %s710_s13 = sphi %s747_s13, %s839_s13   ;;  %s706_s12 = sphi %s745_s12, %s838_s12  }
   0x4   : > { %p26_p0 = scmp.ge.s32.totalorder %s25_s17, 3  ;;  %p49_p2 = scmp.eq.s32.totalorder %s722_s16, 0 }
   0x5   : > { %s41_s19 = sadd.s32 1, %s710_s13  ;;  %p561_p5 = scmp.ge.s32.totalorder %s722_s16, 3 }
   0x6   : > { %s843_s17 = smov (%p26_p0, %s25_s17), 0  ;;  %p50_p3 = por %p49_p2, %p48_p1 }
   0x7   : > { %s37_s18 = ssub.s32 %s718_s15, %s843_s17  ;;  %162 = sbr.rel (%p561_p5) target bundleno = 20 (0x14), region = 20 }
   0x8   : > { %p39_p4 = scmp.eq.s32.totalorder %s37_s18, 0 }
   0xa   : > { %s780_s20 = scalar_select %p39_p4, %s710_s13, %s41_s19  }
   0xc   : > { %165 = sbr.rel (!%p50_p3) target bundleno = 20 (0x14), region = 24  ;;  %s167_s21 = sand.u32 (%p50_p3), 1, %s710_s13  }
   0xd   : > { %s563_s22 = sshll.u32 (%p50_p3), %s718_s15, 2  ;;  %s562_s23 = sshll.u32 (%p50_p3), %s167_s21, 4 }
   0xe   : > { %s174_s26 = scalar_lea.vmem (%p50_p3), %s834_s0, %s563_s22  ;;  %s169_s27 = scalar_lea.vmem (%p50_p3), [#allocation3], %s562_s23 }
   0xf   : > { %v191_v0 = vld [vmem:[%s174_s26] sm:$0xf] (%p50_p3)  ;;  %v193_v1 = vld [vmem:[%s174_s26 + $0xc] sm:$0xf] (%p50_p3)  ;;  %v195_v2 = vld [vmem:[%s174_s26 + $0x18] sm:$0xf] (%p50_p3) }
  0x10   : > { %192 = vst [vmem:[%s169_s27] sm:$0xf] (%p50_p3), %v191_v0  ;;  %v197_v3 = vld [vmem:[%s174_s26 + $0x24] sm:$0xf] (%p50_p3) }
  0x11   : > { %194 = vst [vmem:[%s169_s27 + $0x4] sm:$0xf] %v193_v1 }
  0x12   : > { %196 = vst [vmem:[%s169_s27 + $0x8] sm:$0xf] %v195_v2 }
  0x13   : > { %198 = vst [vmem:[%s169_s27 + $0xc] sm:$0xf] %v197_v3 }
  0x14 PF: > { %p564_p6 = scmp.ge.s32.totalorder %s722_s16, 1  ;;  %p241_p7 = scmp.lt.s32.totalorder %s722_s16, 4 }
  0x16   : > { %p242_p8 = pnand %p564_p6, %p241_p7 }
  0x17   : > { %s248_s28 = sand.u32 (!%p242_p8), 1, %s706_s12   ;;  %s566_s29 = sshll.u32 (!%p242_p8), %s714_s14, 4 }
  0x18   : > { %245 = sbr.rel (%p242_p8) target bundleno = 221 (0xdd), region = 69  ;;  %s792_s30 = sshll.u32 (!%p242_p8), %s248_s28, 4 }
  0x19   : > { %p287_p9 = scmp.lt.s32.totalorder (!%p242_p8), %s566_s29, 47  ;;  %s250_s8 = scalar_lea.vmem (!%p242_p8), [#allocation3], %s792_s30 }
  0x1a   : > { %p568_p10 = scmp.ne.s32.totalorder (!%p242_p8), %s714_s14, 0 }
  0x1d   : > { %s845_s29 = smov (!%p287_p9, %s566_s29), 47  ;;  %310 = sbr.rel (%p568_p10) target bundleno = 39 (0x27), region = 77 }
  0x1e   : > { %s567_s4 = sshll.u32 %s845_s29, 2 }
  0x1f   : > { %s797_s7 = scalar_lea.vmem %s835_s1, %s567_s4 }
  0x22   : > { %v724_v4 = vmov 0.0  }
  0x23   : > { %311 = vst [vmem:[#allocation2 + $0x10] sm:$0xff] %v724_v4 }
  0x24   : > { %312 = vst [vmem:[#allocation2] sm:$0xff] %v724_v4 }
  0x25   : > { %313 = vst [vmem:[#allocation2 + $0x18] sm:$0xff] %v724_v4 }
  0x26   : > { %314 = vst [vmem:[#allocation2 + $0x8] sm:$0xff] %v724_v4 }
  0x27 PF: > { %v613_v5 = vld [vmem:[%s797_s7 + $0x38] sm:$0xff]  ;;  %v612_v6 = vld [vmem:[%s797_s7 + $0x30] sm:$0xff]  ;;  %v611_v7 = vld [vmem:[%s797_s7 + $0x28] sm:$0xff]  ;;  %p601_p11 = scmp.ne.s32.totalorder %s714_s14, 2 }
  0x28   : > { %397 = vmatpush.bf16.msra.mxu0 %v613_v5  ;;  %634 = vmatpush.bf16.msra.mxu1 %v613_v5  ;;  %v610_v8 = vld [vmem:[%s797_s7 + $0x20] sm:$0xff]  ;;  %v609_v9 = vld [vmem:[%s797_s7 + $0x18] sm:$0xff]  ;;  %v608_v10 = vld [vmem:[%s797_s7 + $0x10] sm:$0xff] }
  0x29   : > { %v615_v11 = vld [vmem:[%s250_s8] sm:$0xff]   ;;  %v632_v12 = vld [vmem:[%s250_s8 + $0x8] sm:$0xff]  }
  0x2a   : > { %v616_v13 = vunpack.c.l.bf16 %v615_v11  ;;  %v617_v14 = vunpack.c.h.bf16 %v615_v11  ;;  %v620_v15 = vunpack.c.l.bf16 %v632_v12  ;;  %v621_v16 = vunpack.c.h.bf16 %v632_v12  ;;  %v607_v17 = vld [vmem:[%s797_s7 + $0x8] sm:$0xff]  ;;  %v606_v22 = vld [vmem:[%s797_s7] sm:$0xff]  ;;  %v329_v25 = vld [vmem:[#allocation2 + $0x10] sm:$0xff] }
  0x2b   : > { %v330_v31 = vld [vmem:[#allocation2] sm:$0xff] }
  0x2c   : > { %398 = vmatpush.bf16.msra.mxu0 %v612_v6  ;;  %635 = vmatpush.bf16.msra.mxu1 %v612_v6  ;;  %v323_v18 = vmax.f32 %v616_v13, 0.0  ;;  %v324_v19 = vmax.f32 %v617_v14, 0.0  ;;  %v325_v20 = vmax.f32 %v620_v15, 0.0  ;;  %v326_v21 = vmax.f32 %v621_v16, 0.0  ;;  %v331_v26 = vld [vmem:[#allocation2 + $0x18] sm:$0xff] }
  0x2d   : > { %v332_v32 = vld [vmem:[#allocation2 + $0x8] sm:$0xff] }
  0x2e   : > { %v327_v23 = vpack.c.bf16 %v324_v19, %v323_v18  ;;  %v328_v24 = vpack.c.bf16 %v326_v21, %v325_v20 }
  0x30   : > { %399 = vmatpush.bf16.msra.mxu0 %v611_v7  ;;  %636 = vmatpush.bf16.msra.mxu1 %v611_v7 }
  0x34   : > { %400 = vmatpush.bf16.msra.mxu0 %v610_v8  ;;  %637 = vmatpush.bf16.msra.mxu1 %v610_v8 }
  0x38   : > { %401 = vmatpush.bf16.msra.mxu0 %v609_v9  ;;  %638 = vmatpush.bf16.msra.mxu1 %v609_v9 }
  0x3c   : > { %402 = vmatpush.bf16.msra.mxu0 %v608_v10  ;;  %639 = vmatpush.bf16.msra.mxu1 %v608_v10 }
  0x40   : > { %403 = vmatpush.bf16.msra.mxu0 %v607_v17  ;;  %640 = vmatpush.bf16.msra.mxu1 %v607_v17 }
  0x44   : > { %404 = vmatpush.bf16.msra.mxu0 %v606_v22  ;;  %641 = vmatpush.bf16.msra.mxu1 %v606_v22 }
  0x47   : > { %405 = vmatmul.bf16.vlgmr.msra.gmra.mxu0 %v327_v23  ;;  %410 = vmatmul.bf16.vlgmr.msra.gmra.mxu1 %v328_v24 }
  0xc4   : > { %v406_v27 = vpop.f32.mrf.mxu0  ;;  %v411_v28 = vpop.f32.mrf.mxu1 }
  0xc5   : > { %v416_v29 = vadd.f32 %v406_v27, %v329_v25  ;;  %v418_v30 = vadd.f32 %v411_v28, %v331_v26 }
  0xc7   : > { %420 = vst [vmem:[#allocation2 + $0x10] sm:$0xff] %v416_v29 }
  0xc8   : > { %422 = vst [vmem:[#allocation2 + $0x18] sm:$0xff] %v418_v30 }
  0xcc   : > { %v408_v33 = vpop.f32.mrf.mxu0  ;;  %v413_v34 = vpop.f32.mrf.mxu1  ;;  %427 = sbr.rel (%p601_p11) target bundleno = 221 (0xdd), region = 81 }
  0xcd   : > { %v417_v35 = vadd.f32 %v408_v33, %v330_v31  ;;  %v419_v36 = vadd.f32 %v413_v34, %v332_v32 }
  0xcf   : > { %421 = vst [vmem:[#allocation2] sm:$0xff] %v417_v35 }
  0xd0   : > { %423 = vst [vmem:[#allocation2 + $0x8] sm:$0xff] %v419_v36 }
  0xd1   : > { %v428_v37 = vld [vmem:[#allocation2 + $0x10] sm:$0xff]  ;;  %v683_v39 = vld [vmem:[%s836_s2] ss:$0 sm:$0xff]  ;;  %v430_v40 = vld [vmem:[#allocation2 + $0x18] sm:$0xff] }
  0xd2   : > { %v436_v42 = vadd.f32 %v683_v39, %v428_v37  ;;  %v438_v44 = vadd.f32 %v683_v39, %v430_v40 }
  0xd6   : > { %v429_v38 = vld [vmem:[#allocation2] sm:$0xff] }
  0xd7   : > { %v431_v41 = vld [vmem:[#allocation2 + $0x8] sm:$0xff]  ;;  %v437_v43 = vadd.f32 %v683_v39, %v429_v38 }
  0xd8   : > { %v439_v45 = vadd.f32 %v683_v39, %v431_v41 }
  0xd9   : > { %v625_v46 = vpack.c.bf16 %v437_v43, %v436_v42 }
  0xda   : > { %v630_v47 = vpack.c.bf16 %v439_v45, %v438_v44 }
  0xdb   : > { %626 = vst [vmem:[%s837_s3] sm:$0xff] %v625_v46  }
  0xdc   : > { %633 = vst [vmem:[%s837_s3 + $0x8] sm:$0xff] %v630_v47  }
  0xdd PF: > { %s13_s16 = sadd.s32 1, %s722_s16   ;;  %s838_s12 = smov %s710_s13 }
  0xde   : > { %p10_p12 = scmp.ge.s32.totalorder %s13_s16, 5   ;;  %s839_s13 = smov %s780_s20 }
  0xdf   : > { %s840_s14 = smov %s718_s15  ;;  %s841_s15 = smov %s843_s17 }
  0xe0   :  { %12 = sbr.rel (!%p10_p12) target bundleno = 3 (0x3), region = 122 }

// kernel: _lambda_.21
= control target key start
LH: loop header
LB: loop body
LE: loop exit
PB: predicated region body
PF: predicated region fallthrough
CT: control target
= control target key end

     0   :  { %v160_v0 = vmov 0.0   ;;  %s218_s1 = inlined_call_operand.vmem [shape: f32[1,128], index: 1, kind: output, shape index: {0}]   ;;  %s219_s2 = inlined_call_operand.vmem [shape: f32[1,128], index: 2, kind: output, shape index: {1}]   ;;  %s220_s0 = inlined_call_operand.vmem [shape: bf16[128,128], index: 0, kind: input, shape index: {}]  }
   0x1   :  { %14 = vst [vmem:[%s218_s1] sm:$0x1] %v160_v0  ;;  %v121_v1 = vld [vmem:[%s220_s0] sm:$0xff]   ;;  %v152_v2 = vld [vmem:[%s220_s0 + $0x8] sm:$0xff]   ;;  %v153_v6 = vld [vmem:[%s220_s0 + $0x10] sm:$0xff]  }
   0x2   :  { %15 = vst [vmem:[%s219_s2] sm:$0x1] %v160_v0  ;;  %v122_v3 = vunpack.c.l.bf16 %v121_v1  ;;  %v123_v4 = vunpack.c.h.bf16 %v121_v1  ;;  %v126_v5 = vunpack.c.l.bf16 %v152_v2  ;;  %v127_v7 = vunpack.c.h.bf16 %v152_v2  ;;  %v154_v14 = vld [vmem:[%s220_s0 + $0x18] sm:$0xff]   ;;  %v155_v23 = vld [vmem:[%s220_s0 + $0x20] sm:$0xff]   ;;  %v156_v32 = vld [vmem:[%s220_s0 + $0x28] sm:$0xff]  }
   0x3   :  { %v130_v11 = vunpack.c.l.bf16 %v153_v6  ;;  %v131_v15 = vunpack.c.h.bf16 %v153_v6  ;;  %v134_v19 = vunpack.c.l.bf16 %v154_v14  ;;  %v135_v24 = vunpack.c.h.bf16 %v154_v14  ;;  %v157_v41 = vld [vmem:[%s220_s0 + $0x30] sm:$0xff]   ;;  %v158_v50 = vld [vmem:[%s220_s0 + $0x38] sm:$0xff]  }
   0x4   :  { %v49_v8 = vadd.f32 %v123_v4, %v122_v3  ;;  %v73_v9 = vmul.f32 %v122_v3, %v122_v3  ;;  %v74_v10 = vmul.f32 %v123_v4, %v123_v4  ;;  %v75_v13 = vmul.f32 %v126_v5, %v126_v5 }
   0x5   :  { %v76_v17 = vmul.f32 %v127_v7, %v127_v7  ;;  %v77_v21 = vmul.f32 %v130_v11, %v130_v11  ;;  %v78_v26 = vmul.f32 %v131_v15, %v131_v15  ;;  %v138_v28 = vunpack.c.l.bf16 %v155_v23 }
   0x6   :  { %v50_v12 = vadd.f32 %v126_v5, %v49_v8  ;;  %v89_v18 = vadd.f32 %v74_v10, %v73_v9  ;;  %v79_v30 = vmul.f32 %v134_v19, %v134_v19  ;;  %v139_v33 = vunpack.c.h.bf16 %v155_v23 }
   0x7   :  { %v80_v35 = vmul.f32 %v135_v24, %v135_v24  ;;  %v142_v37 = vunpack.c.l.bf16 %v156_v32  ;;  %v81_v39 = vmul.f32 %v138_v28, %v138_v28  ;;  %v143_v42 = vunpack.c.h.bf16 %v156_v32 }
   0x8   :  { %v51_v16 = vadd.f32 %v127_v7, %v50_v12  ;;  %v90_v22 = vadd.f32 %v89_v18, %v75_v13  ;;  %v82_v44 = vmul.f32 %v139_v33, %v139_v33  ;;  %v146_v46 = vunpack.c.l.bf16 %v157_v41 }
   0x9   :  { %v83_v48 = vmul.f32 %v142_v37, %v142_v37  ;;  %v147_v51 = vunpack.c.h.bf16 %v157_v41  ;;  %v84_v53 = vmul.f32 %v143_v42, %v143_v42  ;;  %v150_v55 = vunpack.c.l.bf16 %v158_v50 }
   0xa   :  { %v52_v20 = vadd.f32 %v130_v11, %v51_v16  ;;  %v91_v27 = vadd.f32 %v90_v22, %v76_v17  ;;  %v85_v57 = vmul.f32 %v146_v46, %v146_v46  ;;  %v151_v59 = vunpack.c.h.bf16 %v158_v50 }
   0xb   :  { %v86_v61 = vmul.f32 %v147_v51, %v147_v51  ;;  %v87_v0 = vmul.f32 %v150_v55, %v150_v55 }
   0xc   :  { %v53_v25 = vadd.f32 %v131_v15, %v52_v20  ;;  %v92_v31 = vadd.f32 %v91_v27, %v77_v21  ;;  %v88_v3 = vmul.f32 %v151_v59, %v151_v59  ;;  %v48_v15 = vld [vmem:[%s218_s1] sm:$0x1] }
   0xd   :  { %v72_v20 = vld [vmem:[%s219_s2] sm:$0x1] }
   0xe   :  { %v54_v29 = vadd.f32 %v134_v19, %v53_v25  ;;  %v93_v36 = vadd.f32 %v92_v31, %v78_v26 }
  0x10   :  { %v55_v34 = vadd.f32 %v135_v24, %v54_v29  ;;  %v94_v40 = vadd.f32 %v93_v36, %v79_v30 }
  0x12   :  { %v56_v38 = vadd.f32 %v138_v28, %v55_v34  ;;  %v95_v45 = vadd.f32 %v94_v40, %v80_v35 }
  0x14   :  { %v57_v43 = vadd.f32 %v139_v33, %v56_v38  ;;  %v96_v49 = vadd.f32 %v95_v45, %v81_v39 }
  0x16   :  { %v58_v47 = vadd.f32 %v142_v37, %v57_v43  ;;  %v97_v54 = vadd.f32 %v96_v49, %v82_v44 }
  0x18   :  { %v59_v52 = vadd.f32 %v143_v42, %v58_v47  ;;  %v98_v58 = vadd.f32 %v97_v54, %v83_v48 }
  0x1a   :  { %v60_v56 = vadd.f32 %v146_v46, %v59_v52  ;;  %v99_v62 = vadd.f32 %v98_v58, %v84_v53 }
  0x1c   :  { %v61_v60 = vadd.f32 %v147_v51, %v60_v56  ;;  %v100_v1 = vadd.f32 %v99_v62, %v85_v57 }
  0x1e   :  { %v62_v63 = vadd.f32 %v150_v55, %v61_v60  ;;  %v101_v4 = vadd.f32 %v100_v1, %v86_v61 }
  0x20   :  { %v63_v2 = vadd.f32 %v151_v59, %v62_v63  ;;  %v102_v6 = vadd.f32 %v101_v4, %v87_v0 }
  0x22   :  { %v64_v5 = vrot.slane %v63_v2, 4  ;;  %v103_v8 = vadd.f32 %v102_v6, %v88_v3 }
  0x24   :  { %v65_v7 = vadd.f32 %v64_v5, %v63_v2  ;;  %v104_v10 = vrot.slane %v103_v8, 4 }
  0x26   :  { %v66_v9 = vrot.slane %v65_v7, 2  ;;  %v105_v12 = vadd.f32 %v104_v10, %v103_v8 }
  0x28   :  { %v67_v11 = vadd.f32 %v66_v9, %v65_v7  ;;  %v106_v14 = vrot.slane %v105_v12, 2 }
  0x2a   :  { %v68_v13 = vrot.slane %v67_v11, 1  ;;  %v107_v17 = vadd.f32 %v106_v14, %v105_v12 }
  0x2c   :  { %v69_v16 = vadd.f32 %v68_v13, %v67_v11  ;;  %v108_v19 = vrot.slane %v107_v17, 1 }
  0x2e   :  { %v70_v18 = vadd.f32 %v69_v16, %v48_v15  ;;  %v109_v21 = vadd.f32 %v108_v19, %v107_v17 }
  0x30   :  { %71 = vst [vmem:[%s218_s1] sm:$0x1] %v70_v18  ;;  %v110_v22 = vadd.f32 %v109_v21, %v72_v20 }
  0x32   :  { %111 = vst [vmem:[%s219_s2] sm:$0x1] %v110_v22 }

// kernel: _lambda_.22
= control target key start
LH: loop header
LB: loop body
LE: loop exit
PB: predicated region body
PF: predicated region fallthrough
CT: control target
= control target key end

     0   :  { %s320_s0 = inlined_call_operand.vmem [shape: bf16[128,128], index: 0, kind: input, shape index: {}]   ;;  %s321_s1 = inlined_call_operand.vmem [shape: f32[1,128], index: 1, kind: input, shape index: {}]   ;;  %s322_s2 = inlined_call_operand.vmem [shape: f32[1,128], index: 2, kind: input, shape index: {}]   ;;  %s323_s3 = inlined_call_operand.vmem [shape: bf16[128,128], index: 3, kind: output, shape index: {}]  }
   0x1   :  { %v123_v0 = vld [vmem:[%s320_s0] sm:$0xff]   ;;  %v194_v5 = vld [vmem:[%s320_s0 + $0x8] sm:$0xff]   ;;  %v195_v8 = vld [vmem:[%s320_s0 + $0x10] sm:$0xff]  }
   0x2   :  { %v236_v1 = vld [vmem:[%s321_s1] ss:$0 sm:$0xff]  ;;  %v124_v2 = vunpack.c.l.bf16 %v123_v0  ;;  %v125_v3 = vunpack.c.h.bf16 %v123_v0  ;;  %v128_v6 = vunpack.c.l.bf16 %v194_v5  ;;  %v129_v7 = vunpack.c.h.bf16 %v194_v5  ;;  %v196_v9 = vld [vmem:[%s320_s0 + $0x18] sm:$0xff]   ;;  %v198_v27 = vld [vmem:[%s320_s0 + $0x28] sm:$0xff]  }
   0x3   :  { %v241_v4 = vld [vmem:[%s322_s2] ss:$0 sm:$0xff]  ;;  %v132_v12 = vunpack.c.l.bf16 %v195_v8  ;;  %v133_v13 = vunpack.c.h.bf16 %v195_v8  ;;  %v136_v16 = vunpack.c.l.bf16 %v196_v9  ;;  %v137_v17 = vunpack.c.h.bf16 %v196_v9  ;;  %v199_v32 = vld [vmem:[%s320_s0 + $0x30] sm:$0xff]   ;;  %v200_v37 = vld [vmem:[%s320_s0 + $0x38] sm:$0xff]  }
   0x4   :  { %v50_v10 = vmul.f32 %v236_v1, %v124_v2  ;;  %v51_v11 = vmul.f32 %v236_v1, %v125_v3  ;;  %v52_v14 = vmul.f32 %v236_v1, %v128_v6  ;;  %v53_v15 = vmul.f32 %v236_v1, %v129_v7  ;;  %v197_v18 = vld [vmem:[%s320_s0 + $0x20] sm:$0xff]  }
   0x5   :  { %v54_v21 = vmul.f32 %v236_v1, %v132_v12  ;;  %v55_v22 = vmul.f32 %v236_v1, %v133_v13  ;;  %v56_v25 = vmul.f32 %v236_v1, %v136_v16  ;;  %v57_v26 = vmul.f32 %v236_v1, %v137_v17 }
   0x6   :  { %v70_v19 = vadd.f32 %v241_v4, %v50_v10  ;;  %v71_v20 = vadd.f32 %v241_v4, %v51_v11  ;;  %v72_v23 = vadd.f32 %v241_v4, %v52_v14  ;;  %v73_v24 = vadd.f32 %v241_v4, %v53_v15 }
   0x7   :  { %v74_v29 = vadd.f32 %v241_v4, %v54_v21  ;;  %v75_v30 = vadd.f32 %v241_v4, %v55_v22  ;;  %v140_v31 = vunpack.c.l.bf16 %v197_v18  ;;  %v76_v34 = vadd.f32 %v241_v4, %v56_v25 }
   0x8   :  { %v157_v28 = vpack.c.bf16 %v71_v20, %v70_v19  ;;  %v162_v33 = vpack.c.bf16 %v73_v24, %v72_v23  ;;  %v77_v35 = vadd.f32 %v241_v4, %v57_v26  ;;  %v141_v36 = vunpack.c.h.bf16 %v197_v18 }
   0x9   :  { %v167_v38 = vpack.c.bf16 %v75_v30, %v74_v29  ;;  %v58_v39 = vmul.f32 %v236_v1, %v140_v31  ;;  %v144_v40 = vunpack.c.l.bf16 %v198_v27  ;;  %v145_v41 = vunpack.c.h.bf16 %v198_v27 }
   0xa   :  { %158 = vst [vmem:[%s323_s3] sm:$0xff] %v157_v28   ;;  %v172_v42 = vpack.c.bf16 %v77_v35, %v76_v34  ;;  %v59_v43 = vmul.f32 %v236_v1, %v141_v36  ;;  %v148_v44 = vunpack.c.l.bf16 %v199_v32  ;;  %v149_v45 = vunpack.c.h.bf16 %v199_v32 }
   0xb   :  { %201 = vst [vmem:[%s323_s3 + $0x8] sm:$0xff] %v162_v33   ;;  %v78_v46 = vadd.f32 %v241_v4, %v58_v39  ;;  %v60_v47 = vmul.f32 %v236_v1, %v144_v40  ;;  %v61_v48 = vmul.f32 %v236_v1, %v145_v41  ;;  %v152_v49 = vunpack.c.l.bf16 %v200_v37 }
   0xc   :  { %202 = vst [vmem:[%s323_s3 + $0x10] sm:$0xff] %v167_v38   ;;  %v79_v50 = vadd.f32 %v241_v4, %v59_v43  ;;  %v62_v51 = vmul.f32 %v236_v1, %v148_v44  ;;  %v63_v52 = vmul.f32 %v236_v1, %v149_v45  ;;  %v153_v53 = vunpack.c.h.bf16 %v200_v37 }
   0xd   :  { %203 = vst [vmem:[%s323_s3 + $0x18] sm:$0xff] %v172_v42   ;;  %v80_v54 = vadd.f32 %v241_v4, %v60_v47  ;;  %v81_v55 = vadd.f32 %v241_v4, %v61_v48  ;;  %v64_v56 = vmul.f32 %v236_v1, %v152_v49 }
   0xe   :  { %v177_v57 = vpack.c.bf16 %v79_v50, %v78_v46  ;;  %v82_v58 = vadd.f32 %v241_v4, %v62_v51  ;;  %v83_v59 = vadd.f32 %v241_v4, %v63_v52  ;;  %v65_v60 = vmul.f32 %v236_v1, %v153_v53 }
   0xf   :  { %v182_v61 = vpack.c.bf16 %v81_v55, %v80_v54  ;;  %v84_v62 = vadd.f32 %v241_v4, %v64_v56 }
  0x10   :  { %204 = vst [vmem:[%s323_s3 + $0x20] sm:$0xff] %v177_v57   ;;  %v187_v63 = vpack.c.bf16 %v83_v59, %v82_v58  ;;  %v85_v0 = vadd.f32 %v241_v4, %v65_v60 }
  0x11   :  { %205 = vst [vmem:[%s323_s3 + $0x28] sm:$0xff] %v182_v61  }
  0x12   :  { %206 = vst [vmem:[%s323_s3 + $0x30] sm:$0xff] %v187_v63   ;;  %v192_v2 = vpack.c.bf16 %v85_v0, %v84_v62 }
  0x14   :  { %207 = vst [vmem:[%s323_s3 + $0x38] sm:$0xff] %v192_v2  }

// kernel: _lambda_.23
= control target key start
LH: loop header
LB: loop body
LE: loop exit
PB: predicated region body
PF: predicated region fallthrough
CT: control target
= control target key end

     0   :  { %s832_s1 = inlined_call_operand.vmem [shape: bf16[256,128], index: 1, kind: input, shape index: {}]   ;;  %s833_s0 = inlined_call_operand.vmem [shape: bf16[128,256], index: 0, kind: input, shape index: {}]   ;;  %s834_s2 = inlined_call_operand.vmem [shape: f32[1,128], index: 2, kind: input, shape index: {}]   ;;  %s835_s3 = inlined_call_operand.vmem [shape: bf16[128,128], index: 3, kind: output, shape index: {}]  }
   0x1   :  { %v566_v0 = vld [vmem:[%s832_s1 + $0x38] sm:$0xff]  ;;  %v565_v2 = vld [vmem:[%s832_s1 + $0x30] sm:$0xff]  ;;  %v564_v4 = vld [vmem:[%s832_s1 + $0x28] sm:$0xff] }
   0x2   :  { %v574_v1 = vld [vmem:[%s832_s1 + $0x78] sm:$0xff]  ;;  %274 = vmatpush.bf16.msra.mxu0 %v566_v0  ;;  %622 = vmatpush.bf16.msra.mxu2 %v566_v0  ;;  %v573_v3 = vld [vmem:[%s832_s1 + $0x70] sm:$0xff]  ;;  %v572_v5 = vld [vmem:[%s832_s1 + $0x68] sm:$0xff] }
   0x3   :  { %323 = vmatpush.bf16.msra.mxu1 %v574_v1  ;;  %630 = vmatpush.bf16.msra.mxu3 %v574_v1  ;;  %v563_v6 = vld [vmem:[%s832_s1 + $0x20] sm:$0xff]  ;;  %v562_v8 = vld [vmem:[%s832_s1 + $0x18] sm:$0xff]  ;;  %v561_v10 = vld [vmem:[%s832_s1 + $0x10] sm:$0xff] }
   0x4   :  { %v571_v7 = vld [vmem:[%s832_s1 + $0x60] sm:$0xff]  ;;  %v570_v9 = vld [vmem:[%s832_s1 + $0x58] sm:$0xff]  ;;  %v35_v12 = vld [vmem:[%s833_s0 + $0x8] sm:$0xff] }
   0x5   :  { %v34_v11 = vld [vmem:[%s833_s0] sm:$0xff]  ;;  %v43_v14 = vld [vmem:[%s833_s0 + $0x48] sm:$0xff]  ;;  %v569_v15 = vld [vmem:[%s832_s1 + $0x50] sm:$0xff]  ;;  %v52_v17 = vunpack.c.l.bf16 %v35_v12  ;;  %v53_v22 = vunpack.c.h.bf16 %v35_v12 }
   0x6   :  { %275 = vmatpush.bf16.msra.mxu0 %v565_v2  ;;  %623 = vmatpush.bf16.msra.mxu2 %v565_v2  ;;  %v42_v13 = vld [vmem:[%s833_s0 + $0x40] sm:$0xff]  ;;  %v50_v16 = vunpack.c.l.bf16 %v34_v11  ;;  %v68_v19 = vunpack.c.l.bf16 %v43_v14  ;;  %v560_v20 = vld [vmem:[%s832_s1 + $0x8] sm:$0xff]  ;;  %v51_v21 = vunpack.c.h.bf16 %v34_v11  ;;  %v69_v24 = vunpack.c.h.bf16 %v43_v14  ;;  %v36_v40 = vld [vmem:[%s833_s0 + $0x10] sm:$0xff] }
   0x7   :  { %324 = vmatpush.bf16.msra.mxu1 %v573_v3  ;;  %631 = vmatpush.bf16.msra.mxu3 %v573_v3  ;;  %v66_v18 = vunpack.c.l.bf16 %v42_v13  ;;  %v67_v23 = vunpack.c.h.bf16 %v42_v13  ;;  %v568_v25 = vld [vmem:[%s832_s1 + $0x48] sm:$0xff]  ;;  %v84_v27 = vmax.f32 %v52_v17, 0.0  ;;  %v559_v30 = vld [vmem:[%s832_s1] sm:$0xff]  ;;  %v85_v32 = vmax.f32 %v53_v22, 0.0  ;;  %v37_v41 = vld [vmem:[%s833_s0 + $0x18] sm:$0xff] }
   0x8   :  { %v82_v26 = vmax.f32 %v50_v16, 0.0  ;;  %v100_v29 = vmax.f32 %v68_v19, 0.0  ;;  %v83_v31 = vmax.f32 %v51_v21, 0.0  ;;  %v101_v34 = vmax.f32 %v69_v24, 0.0  ;;  %v567_v35 = vld [vmem:[%s832_s1 + $0x40] sm:$0xff]  ;;  %v44_v42 = vld [vmem:[%s833_s0 + $0x50] sm:$0xff] }
   0x9   :  { %v98_v28 = vmax.f32 %v66_v18, 0.0  ;;  %v99_v33 = vmax.f32 %v67_v23, 0.0  ;;  %v45_v43 = vld [vmem:[%s833_s0 + $0x58] sm:$0xff]  ;;  %v54_v44 = vunpack.c.l.bf16 %v36_v40  ;;  %v56_v45 = vunpack.c.l.bf16 %v37_v41  ;;  %v38_v0 = vld [vmem:[%s833_s0 + $0x20] sm:$0xff]  ;;  %v39_v1 = vld [vmem:[%s833_s0 + $0x28] sm:$0xff] }
   0xa   :  { %276 = vmatpush.bf16.msra.mxu0 %v564_v4  ;;  %624 = vmatpush.bf16.msra.mxu2 %v564_v4  ;;  %v114_v36 = vpack.c.bf16 %v84_v27, %v82_v26  ;;  %v115_v38 = vpack.c.bf16 %v85_v32, %v83_v31  ;;  %v70_v46 = vunpack.c.l.bf16 %v44_v42  ;;  %v72_v47 = vunpack.c.l.bf16 %v45_v43  ;;  %v46_v2 = vld [vmem:[%s833_s0 + $0x60] sm:$0xff]  ;;  %v47_v3 = vld [vmem:[%s833_s0 + $0x68] sm:$0xff]  ;;  %v40_v24 = vld [vmem:[%s833_s0 + $0x30] sm:$0xff] }
   0xb   :  { %325 = vmatpush.bf16.msra.mxu1 %v572_v5  ;;  %632 = vmatpush.bf16.msra.mxu3 %v572_v5  ;;  %v122_v37 = vpack.c.bf16 %v100_v29, %v98_v28  ;;  %v123_v39 = vpack.c.bf16 %v101_v34, %v99_v33  ;;  %v55_v48 = vunpack.c.h.bf16 %v36_v40  ;;  %v57_v49 = vunpack.c.h.bf16 %v37_v41  ;;  %v48_v26 = vld [vmem:[%s833_s0 + $0x70] sm:$0xff]  ;;  %v49_v27 = vld [vmem:[%s833_s0 + $0x78] sm:$0xff] }
   0xc   :  { %v71_v50 = vunpack.c.h.bf16 %v44_v42  ;;  %v73_v51 = vunpack.c.h.bf16 %v45_v43  ;;  %v86_v52 = vmax.f32 %v54_v44, 0.0  ;;  %v88_v53 = vmax.f32 %v56_v45, 0.0 }
   0xd   :  { %v102_v54 = vmax.f32 %v70_v46, 0.0  ;;  %v104_v55 = vmax.f32 %v72_v47, 0.0  ;;  %v87_v56 = vmax.f32 %v55_v48, 0.0  ;;  %v89_v57 = vmax.f32 %v57_v49, 0.0 }
   0xe   :  { %277 = vmatpush.bf16.msra.mxu0 %v563_v6  ;;  %625 = vmatpush.bf16.msra.mxu2 %v563_v6  ;;  %v103_v58 = vmax.f32 %v71_v50, 0.0  ;;  %v105_v59 = vmax.f32 %v73_v51, 0.0  ;;  %v116_v60 = vpack.c.bf16 %v88_v53, %v86_v52  ;;  %v58_v4 = vunpack.c.l.bf16 %v38_v0  ;;  %v790_v51 = vld [vmem:[%s834_s2] ss:$0 sm:$0xff] }
   0xf   :  { %326 = vmatpush.bf16.msra.mxu1 %v571_v7  ;;  %633 = vmatpush.bf16.msra.mxu3 %v571_v7  ;;  %v124_v61 = vpack.c.bf16 %v104_v55, %v102_v54  ;;  %v117_v62 = vpack.c.bf16 %v89_v57, %v87_v56  ;;  %v60_v5 = vunpack.c.l.bf16 %v39_v1  ;;  %v74_v6 = vunpack.c.l.bf16 %v46_v2 }
  0x10   :  { %v125_v63 = vpack.c.bf16 %v105_v59, %v103_v58  ;;  %v76_v7 = vunpack.c.l.bf16 %v47_v3  ;;  %v77_v11 = vunpack.c.h.bf16 %v47_v3  ;;  %v90_v12 = vmax.f32 %v58_v4, 0.0 }
  0x11   :  { %v92_v13 = vmax.f32 %v60_v5, 0.0  ;;  %v106_v14 = vmax.f32 %v74_v6, 0.0  ;;  %v62_v28 = vunpack.c.l.bf16 %v40_v24  ;;  %v80_v31 = vunpack.c.l.bf16 %v49_v27 }
  0x12   :  { %278 = vmatpush.bf16.msra.mxu0 %v562_v8  ;;  %626 = vmatpush.bf16.msra.mxu2 %v562_v8  ;;  %v59_v8 = vunpack.c.h.bf16 %v38_v0  ;;  %v109_v19 = vmax.f32 %v77_v11, 0.0  ;;  %v63_v32 = vunpack.c.h.bf16 %v40_v24  ;;  %v79_v34 = vunpack.c.h.bf16 %v48_v26 }
  0x13   :  { %327 = vmatpush.bf16.msra.mxu1 %v570_v9  ;;  %634 = vmatpush.bf16.msra.mxu3 %v570_v9  ;;  %v61_v9 = vunpack.c.h.bf16 %v39_v1 }
  0x14   :  { %v91_v16 = vmax.f32 %v59_v8, 0.0  ;;  %v95_v40 = vmax.f32 %v63_v32, 0.0  ;;  %v111_v42 = vmax.f32 %v79_v34, 0.0 }
  0x15   :  { %v93_v17 = vmax.f32 %v61_v9, 0.0 }
  0x16   :  { %279 = vmatpush.bf16.msra.mxu0 %v561_v10  ;;  %627 = vmatpush.bf16.msra.mxu2 %v561_v10  ;;  %v75_v10 = vunpack.c.h.bf16 %v46_v2 }
  0x17   :  { %328 = vmatpush.bf16.msra.mxu1 %v569_v15  ;;  %635 = vmatpush.bf16.msra.mxu3 %v569_v15  ;;  %v108_v15 = vmax.f32 %v76_v7, 0.0  ;;  %v119_v22 = vpack.c.bf16 %v93_v17, %v91_v16 }
  0x18   :  { %v107_v18 = vmax.f32 %v75_v10, 0.0 }
  0x19   :  { %v126_v21 = vpack.c.bf16 %v108_v15, %v106_v14 }
  0x1a   :  { %280 = vmatpush.bf16.msra.mxu0 %v560_v20  ;;  %628 = vmatpush.bf16.msra.mxu2 %v560_v20  ;;  %v118_v20 = vpack.c.bf16 %v92_v13, %v90_v12  ;;  %v127_v23 = vpack.c.bf16 %v109_v19, %v107_v18 }
  0x1b   :  { %329 = vmatpush.bf16.msra.mxu1 %v568_v25  ;;  %636 = vmatpush.bf16.msra.mxu3 %v568_v25  ;;  %v41_v25 = vld [vmem:[%s833_s0 + $0x38] sm:$0xff] }
  0x1c   :  { %v64_v29 = vunpack.c.l.bf16 %v41_v25  ;;  %v65_v33 = vunpack.c.h.bf16 %v41_v25 }
  0x1e   :  { %281 = vmatpush.bf16.msra.mxu0 %v559_v30  ;;  %629 = vmatpush.bf16.msra.mxu2 %v559_v30  ;;  %v78_v30 = vunpack.c.l.bf16 %v48_v26  ;;  %v97_v41 = vmax.f32 %v65_v33, 0.0 }
  0x1f   :  { %330 = vmatpush.bf16.msra.mxu1 %v567_v35  ;;  %637 = vmatpush.bf16.msra.mxu3 %v567_v35  ;;  %v81_v35 = vunpack.c.h.bf16 %v49_v27 }
  0x20   :  { %v121_v46 = vpack.c.bf16 %v97_v41, %v95_v40 }
  0x21   :  { %282 = vmatmul.bf16.vlgmr.msra.gmra.mxu0 %v114_v36  ;;  %302 = vmatmul.bf16.vlgmr.msra.gmra.mxu2 %v122_v37  ;;  %v94_v36 = vmax.f32 %v62_v28, 0.0  ;;  %v96_v37 = vmax.f32 %v64_v29, 0.0  ;;  %v113_v43 = vmax.f32 %v81_v35, 0.0 }
  0x22   :  { %331 = vmatmul.bf16.vlgmr.msra.gmra.mxu1 %v115_v38  ;;  %351 = vmatmul.bf16.vlgmr.msra.gmra.mxu3 %v123_v39  ;;  %v110_v38 = vmax.f32 %v78_v30, 0.0  ;;  %v112_v39 = vmax.f32 %v80_v31, 0.0 }
  0x23   :  { %v120_v44 = vpack.c.bf16 %v96_v37, %v94_v36  ;;  %v129_v47 = vpack.c.bf16 %v113_v43, %v111_v42 }
  0x24   :  { %v128_v45 = vpack.c.bf16 %v112_v39, %v110_v38 }
  0x31   :  { %287 = vmatmul.bf16.gmra.mxu0 %v116_v60  ;;  %307 = vmatmul.bf16.gmra.mxu2 %v124_v61 }
  0x32   :  { %336 = vmatmul.bf16.gmra.mxu1 %v117_v62  ;;  %356 = vmatmul.bf16.gmra.mxu3 %v125_v63 }
  0x41   :  { %292 = vmatmul.bf16.gmra.mxu0 %v118_v20  ;;  %312 = vmatmul.bf16.gmra.mxu2 %v126_v21 }
  0x42   :  { %341 = vmatmul.bf16.gmra.mxu1 %v119_v22  ;;  %361 = vmatmul.bf16.gmra.mxu3 %v127_v23 }
  0x51   :  { %297 = vmatmul.bf16.gmra.mxu0 %v120_v44  ;;  %317 = vmatmul.bf16.gmra.mxu2 %v128_v45 }
  0x52   :  { %346 = vmatmul.bf16.gmra.mxu1 %v121_v46  ;;  %366 = vmatmul.bf16.gmra.mxu3 %v129_v47 }
  0x9e   :  { %v283_v48 = vpop.f32.mrf.mxu0 }
  0x9f   :  { %v332_v49 = vpop.f32.mrf.mxu1 }
  0xa0   :  { %v333_v50 = vadd.f32 %v332_v49, %v283_v48 }
  0xa2   :  { %v427_v55 = vadd.f32 %v790_v51, %v333_v50 }
  0xa4   :  { %v303_v52 = vpop.f32.mrf.mxu2  ;;  %639 = vtanh.f32 %v427_v55 }
  0xa5   :  { %v352_v53 = vpop.f32.mrf.mxu3 }
  0xa6   :  { %v285_v54 = vpop.f32.mrf.mxu0  ;;  %v353_v58 = vadd.f32 %v352_v53, %v303_v52 }
  0xa7   :  { %v334_v56 = vpop.f32.mrf.mxu1 }
  0xa8   :  { %v335_v57 = vadd.f32 %v334_v56, %v285_v54  ;;  %v435_v61 = vadd.f32 %v790_v51, %v353_v58 }
  0xaa   :  { %v428_v59 = vadd.f32 %v790_v51, %v335_v57  ;;  %v640_v3 = vpop.eup %639 }
  0xac   :  { %641 = vtanh.f32 %v428_v59  ;;  %v305_v60 = vpop.f32.mrf.mxu2 }
  0xad   :  { %v354_v62 = vpop.f32.mrf.mxu3  ;;  %643 = vtanh.f32 %v435_v61 }
  0xae   :  { %v355_v63 = vadd.f32 %v354_v62, %v305_v60  ;;  %v288_v0 = vpop.f32.mrf.mxu0 }
  0xaf   :  { %v337_v1 = vpop.f32.mrf.mxu1 }
  0xb0   :  { %v436_v2 = vadd.f32 %v790_v51, %v355_v63  ;;  %v338_v6 = vadd.f32 %v337_v1, %v288_v0 }
  0xb2   :  { %v642_v4 = vpop.eup %641  ;;  %645 = vtanh.f32 %v436_v2  ;;  %v429_v11 = vadd.f32 %v790_v51, %v338_v6 }
  0xb3   :  { %v578_v5 = vpack.c.bf16 %v642_v4, %v640_v3  ;;  %v644_v10 = vpop.eup %643 }
  0xb4   :  { %v308_v7 = vpop.f32.mrf.mxu2  ;;  %647 = vtanh.f32 %v429_v11 }
  0xb5   :  { %579 = vst [vmem:[%s835_s3] sm:$0xff] %v578_v5   ;;  %v357_v8 = vpop.f32.mrf.mxu3 }
  0xb6   :  { %v290_v9 = vpop.f32.mrf.mxu0  ;;  %v358_v16 = vadd.f32 %v357_v8, %v308_v7 }
  0xb7   :  { %v339_v12 = vpop.f32.mrf.mxu1 }
  0xb8   :  { %v646_v13 = vpop.eup %645  ;;  %v340_v14 = vadd.f32 %v339_v12, %v290_v9  ;;  %v437_v19 = vadd.f32 %v790_v51, %v358_v16 }
  0xb9   :  { %v598_v15 = vpack.c.bf16 %v646_v13, %v644_v10 }
  0xba   :  { %v430_v17 = vadd.f32 %v790_v51, %v340_v14  ;;  %v648_v25 = vpop.eup %647 }
  0xbb   :  { %618 = vst [vmem:[%s835_s3 + $0x20] sm:$0xff] %v598_v15  }
  0xbc   :  { %649 = vtanh.f32 %v430_v17  ;;  %v310_v18 = vpop.f32.mrf.mxu2 }
  0xbd   :  { %v359_v20 = vpop.f32.mrf.mxu3  ;;  %651 = vtanh.f32 %v437_v19 }
  0xbe   :  { %v360_v21 = vadd.f32 %v359_v20, %v310_v18  ;;  %v293_v22 = vpop.f32.mrf.mxu0 }
  0xbf   :  { %v342_v23 = vpop.f32.mrf.mxu1 }
  0xc0   :  { %v438_v24 = vadd.f32 %v790_v51, %v360_v21  ;;  %v343_v28 = vadd.f32 %v342_v23, %v293_v22 }
  0xc2   :  { %v650_v26 = vpop.eup %649  ;;  %653 = vtanh.f32 %v438_v24  ;;  %v431_v33 = vadd.f32 %v790_v51, %v343_v28 }
  0xc3   :  { %v583_v27 = vpack.c.bf16 %v650_v26, %v648_v25  ;;  %v652_v32 = vpop.eup %651 }
  0xc4   :  { %v313_v29 = vpop.f32.mrf.mxu2  ;;  %655 = vtanh.f32 %v431_v33 }
  0xc5   :  { %615 = vst [vmem:[%s835_s3 + $0x8] sm:$0xff] %v583_v27   ;;  %v362_v30 = vpop.f32.mrf.mxu3 }
  0xc6   :  { %v295_v31 = vpop.f32.mrf.mxu0  ;;  %v363_v38 = vadd.f32 %v362_v30, %v313_v29 }
  0xc7   :  { %v344_v34 = vpop.f32.mrf.mxu1 }
  0xc8   :  { %v654_v35 = vpop.eup %653  ;;  %v345_v36 = vadd.f32 %v344_v34, %v295_v31  ;;  %v439_v41 = vadd.f32 %v790_v51, %v363_v38 }
  0xc9   :  { %v603_v37 = vpack.c.bf16 %v654_v35, %v652_v32 }
  0xca   :  { %v432_v39 = vadd.f32 %v790_v51, %v345_v36  ;;  %v656_v47 = vpop.eup %655 }
  0xcb   :  { %619 = vst [vmem:[%s835_s3 + $0x28] sm:$0xff] %v603_v37  }
  0xcc   :  { %657 = vtanh.f32 %v432_v39  ;;  %v315_v40 = vpop.f32.mrf.mxu2 }
  0xcd   :  { %v364_v42 = vpop.f32.mrf.mxu3  ;;  %659 = vtanh.f32 %v439_v41 }
  0xce   :  { %v365_v43 = vadd.f32 %v364_v42, %v315_v40  ;;  %v298_v44 = vpop.f32.mrf.mxu0 }
  0xcf   :  { %v347_v45 = vpop.f32.mrf.mxu1 }
  0xd0   :  { %v440_v46 = vadd.f32 %v790_v51, %v365_v43  ;;  %v348_v50 = vadd.f32 %v347_v45, %v298_v44 }
  0xd2   :  { %v658_v48 = vpop.eup %657  ;;  %661 = vtanh.f32 %v440_v46  ;;  %v433_v56 = vadd.f32 %v790_v51, %v348_v50 }
  0xd3   :  { %v588_v49 = vpack.c.bf16 %v658_v48, %v656_v47  ;;  %v660_v55 = vpop.eup %659 }
  0xd4   :  { %v318_v52 = vpop.f32.mrf.mxu2  ;;  %663 = vtanh.f32 %v433_v56 }
  0xd5   :  { %616 = vst [vmem:[%s835_s3 + $0x10] sm:$0xff] %v588_v49   ;;  %v367_v53 = vpop.f32.mrf.mxu3 }
  0xd6   :  { %v300_v54 = vpop.f32.mrf.mxu0  ;;  %v368_v61 = vadd.f32 %v367_v53, %v318_v52 }
  0xd7   :  { %v349_v57 = vpop.f32.mrf.mxu1 }
  0xd8   :  { %v662_v58 = vpop.eup %661  ;;  %v350_v59 = vadd.f32 %v349_v57, %v300_v54  ;;  %v441_v0 = vadd.f32 %v790_v51, %v368_v61 }
  0xd9   :  { %v608_v60 = vpack.c.bf16 %v662_v58, %v660_v55 }
  0xda   :  { %v434_v62 = vadd.f32 %v790_v51, %v350_v59  ;;  %v664_v4 = vpop.eup %663 }
  0xdb   :  { %620 = vst [vmem:[%s835_s3 + $0x30] sm:$0xff] %v608_v60  }
  0xdc   :  { %665 = vtanh.f32 %v434_v62  ;;  %v320_v63 = vpop.f32.mrf.mxu2 }
  0xdd   :  { %v369_v1 = vpop.f32.mrf.mxu3  ;;  %667 = vtanh.f32 %v441_v0 }
  0xde   :  { %v370_v2 = vadd.f32 %v369_v1, %v320_v63 }
  0xe0   :  { %v442_v3 = vadd.f32 %v790_v51, %v370_v2 }
  0xe2   :  { %v666_v5 = vpop.eup %665  ;;  %669 = vtanh.f32 %v442_v3 }
  0xe3   :  { %v593_v6 = vpack.c.bf16 %v666_v5, %v664_v4  ;;  %v668_v7 = vpop.eup %667 }
  0xe5   :  { %617 = vst [vmem:[%s835_s3 + $0x18] sm:$0xff] %v593_v6  }
  0xe8   :  { %v670_v8 = vpop.eup %669 }
  0xe9   :  { %v613_v9 = vpack.c.bf16 %v670_v8, %v668_v7 }
  0xeb   :  { %621 = vst [vmem:[%s835_s3 + $0x38] sm:$0xff] %v613_v9  }

</bundles_post_ra>
